<compile_context>
chip_gen: v5e
topology: v5e:2x2
jax: 0.10.0
libtpu: 0.0.40
codegen_flags: <defaults>
</compile_context>

<pallas_src>
import jax
import jax.numpy as jnp
from jax.experimental import pallas as pl
from jax.experimental.pallas import tpu as pltpu

_BN_EPS = 1e-5


# ---------------------------------------------------------------------------
# Fused kernel (one batch element per grid step):
#   conv1(4x4,s2,p1)+BN+LReLU -> conv2(4x4,s2,p1)+BN+LReLU -> 1x1 conv+sigmoid
# ---------------------------------------------------------------------------
def _d_cnn_fused_kernel(x1_ref, w1_ref, s1_ref, w2_ref, s2_ref, w3_ref, b3_ref,
                        o_ref, p2_ref):
    # x1_ref: (1, 4*oh2*ow2, 16*cin) bf16  conv1 im2col, rows grouped by
    #         conv2-input phase: (phase, oy2, ox2)
    # w1_ref: (16*cin, 128) bf16 (BN1 scale folded)      s1_ref: (1, 128) f32
    # w2_ref: (16*128, 128) bf16 (BN2 scale folded, cols 64.. are zero)
    # s2_ref: (1, 128) f32 (cols 64.. zero)
    # w3_ref: (128, 128) bf16 (col 0 real, rest zero)    b3_ref: (1, 128) f32
    # o_ref : (1, oh2*ow2, 128) f32 lane-dense output (lane 0 is the result)
    # p2_ref: (4, oh2+1, ow2+1, 128) bf16 scratch: conv2 input phase planes
    _, oh2p1, ow2p1, c1 = p2_ref.shape
    oh2, ow2 = oh2p1 - 1, ow2p1 - 1
    m2 = oh2 * ow2

    # ---- conv1 + BN + LeakyReLU: ONE matmul, K = 16*cin (MXU stays full)
    y1 = jnp.dot(x1_ref[0], w1_ref[...], preferred_element_type=jnp.float32)
    y1 = y1 + s1_ref[...]                      # conv bias + BN shift (scale in w1)
    y1 = jnp.where(y1 > 0, y1, 0.2 * y1)       # LeakyReLU(0.2); Dropout2d = id (eval)
    y1 = y1.astype(p2_ref.dtype)

    # ---- 4 bulk phase-plane stores (rows already grouped by phase) ---------
    g = y1.reshape(4, oh2, ow2, c1)
    p2_ref[0, 1:oh2 + 1, 1:ow2 + 1, :] = g[0]      # oy odd , ox odd
    p2_ref[1, 1:oh2 + 1, 0:ow2, :] = g[1]          # oy odd , ox even
    p2_ref[2, 0:oh2, 1:ow2 + 1, :] = g[2]          # oy even, ox odd
    p2_ref[3, 0:oh2, 0:ow2, :] = g[3]              # oy even, ox even

    # ---- zero only the 1-pixel padding halo (conv2's spatial padding) ------
    zrow = jnp.zeros((1, ow2p1, c1), p2_ref.dtype)
    zcol = jnp.zeros((oh2, 1, c1), p2_ref.dtype)
    p2_ref[0, 0:1, :, :] = zrow
    p2_ref[0, 1:oh2 + 1, 0:1, :] = zcol
    p2_ref[1, 0:1, :, :] = zrow
    p2_ref[1, 1:oh2 + 1, ow2:ow2 + 1, :] = zcol
    p2_ref[2, oh2:oh2 + 1, :, :] = zrow
    p2_ref[2, 0:oh2, 0:1, :] = zcol
    p2_ref[3, oh2:oh2 + 1, :, :] = zrow
    p2_ref[3, 0:oh2, ow2:ow2 + 1, :] = zcol

    # ---- conv2 + BN + LeakyReLU: gather 16 taps, ONE matmul with K = 2048 --
    taps = []
    for i in range(4):
        for j in range(4):
            ph = (i % 2) * 2 + (j % 2)
            a, b = i // 2, j // 2
            taps.append(p2_ref[ph, a:a + oh2, b:b + ow2, :])   # (oh2, ow2, 128)
    x2 = jnp.concatenate(taps, axis=-1).reshape(m2, 16 * c1)   # (m2, 2048) bf16
    y2 = jnp.dot(x2, w2_ref[...], preferred_element_type=jnp.float32)
    y2 = y2 + s2_ref[...]
    y2 = jnp.where(y2 > 0, y2, 0.2 * y2)       # cols 64.. stay exactly 0
    y2 = y2.astype(w3_ref.dtype)               # bf16 for the MXU

    # ---- conv3 (1x1) + numerically stable sigmoid, lane-dense store --------
    t = jnp.dot(y2, w3_ref[...], preferred_element_type=jnp.float32) + b3_ref[...]
    z = jnp.exp(-jnp.abs(t))
    o_ref[0] = jnp.where(t >= 0, 1.0 / (1.0 + z), z / (1.0 + z))


# ---------------------------------------------------------------------------
# Forward wrapper (layout plumbing only; all compute is in the kernel)
# ---------------------------------------------------------------------------
def d_cnn_forward(x_nchw, params):
    n, cin, h, w = x_nchw.shape
    assert h % 4 == 0 and w % 4 == 0, "spatial dims must be divisible by 4"
    oh1, ow1 = h // 2, w // 2
    oh2, ow2 = oh1 // 2, ow1 // 2
    k1 = 16 * cin
    m1b = 4 * oh2 * ow2          # conv1 output rows per batch element
    m2b = oh2 * ow2              # conv2/conv3 output rows per batch element

    # NCHW -> NHWC, cast to bf16 BEFORE the layout ops (halves HBM traffic)
    x = jnp.transpose(x_nchw, (0, 2, 3, 1)).astype(jnp.bfloat16)
    xp = jnp.pad(x, ((0, 0), (1, 1), (1, 1), (0, 0)))
    # conv1 im2col: 16 taps concatenated along K (tap-major, channel-minor)
    taps = [xp[:, i::2, j::2, :][:, :oh1, :ow1, :]
            for i in range(4) for j in range(4)]
    patches = jnp.concatenate(taps, axis=-1)                 # (n, oh1, ow1, 16*cin)
    # group conv1-output rows by conv2-input phase so the kernel can emit
    # 4 bulk phase-plane stores instead of a per-pixel scatter
    groups = [patches[:, 1::2, 1::2, :], patches[:, 1::2, 0::2, :],
              patches[:, 0::2, 1::2, :], patches[:, 0::2, 0::2, :]]
    x1 = jnp.stack(groups, axis=1).reshape(n, m1b, k1)       # (n, 4*oh2*ow2, 16*cin)

    out = pl.pallas_call(
        _d_cnn_fused_kernel,
        grid=(n,),
        out_shape=jax.ShapeDtypeStruct((n, m2b, 128), jnp.float32),
        in_specs=[
            pl.BlockSpec((1, m1b, k1), lambda b: (b, 0, 0)),      # conv1 im2col
            pl.BlockSpec((k1, 128), lambda b: (0, 0)),            # w1 (folded)
            pl.BlockSpec((1, 128), lambda b: (0, 0)),             # shift1
            pl.BlockSpec((16 * 128, 128), lambda b: (0, 0)),      # w2 (folded, padded)
            pl.BlockSpec((1, 128), lambda b: (0, 0)),             # shift2
            pl.BlockSpec((128, 128), lambda b: (0, 0)),           # w3 (padded)
            pl.BlockSpec((1, 128), lambda b: (0, 0)),             # b3
        ],
        out_specs=pl.BlockSpec((1, m2b, 128), lambda b: (b, 0, 0)),
        scratch_shapes=[pltpu.VMEM((4, oh2 + 1, ow2 + 1, 128), jnp.bfloat16)],
        compiler_params=pltpu.CompilerParams(
            dimension_semantics=("parallel",),        # batch split across TCs (v7x)
            vmem_limit_bytes=32 * 1024 * 1024),
    )(x1, params["w1"], params["shift1"], params["w2"], params["shift2"],
      params["w3"], params["b3"])

    # lane 0 holds the 1x1-conv+sigmoid result; rows ordered (n, oy2, ox2),
    # which matches PyTorch's (N, 1, H2, W2).view(-1) order.
    return out[:, :, 0].reshape(-1)


# ---------------------------------------------------------------------------
# Parameter construction (PyTorch-shaped raw params + packing for the kernel)
# ---------------------------------------------------------------------------
def init_raw_params(key, in_ch):
    ks = jax.random.split(key, 8)

    def conv_w(k, co, ci, kh, kw):
        return 0.05 * jax.random.normal(k, (co, ci, kh, kw), jnp.float32)

    def bn(k, ch):
        k1, k2, k3, k4 = jax.random.split(k, 4)
        return dict(
            gamma=1.0 + 0.1 * jax.random.normal(k1, (ch,), jnp.float32),
            beta=0.1 * jax.random.normal(k2, (ch,), jnp.float32),
            mean=0.05 * jax.random.normal(k3, (ch,), jnp.float32),
            var=1.0 + 0.1 * jnp.abs(jax.random.normal(k4, (ch,), jnp.float32)),
        )

    return dict(
        w1=conv_w(ks[0], 128, in_ch, 4, 4),
        b1=0.02 * jax.random.normal(ks[1], (128,), jnp.float32),
        bn1=bn(ks[2], 128),
        w2=conv_w(ks[3], 64, 128, 4, 4),
        b2=0.02 * jax.random.normal(ks[4], (64,), jnp.float32),
        bn2=bn(ks[5], 64),
        w3=conv_w(ks[6], 1, 64, 1, 1),
        b3=0.02 * jax.random.normal(ks[7], (1,), jnp.float32),
    )


def pack_params(raw):
    def fold(w, b, bn, pad_to=None):
        scale = bn["gamma"] / jnp.sqrt(bn["var"] + _BN_EPS)            # (Cout,)
        shift = bn["beta"] + (b - bn["mean"]) * scale                  # bias + BN shift
        co, ci, kh, kw = w.shape
        # (Cout, Cin, KH, KW) -> (KH*KW*Cin, Cout), K index = (kh*KW+kw)*Cin + c
        wk = (jnp.transpose(w, (2, 3, 1, 0)).reshape(kh * kw * ci, co)
              * scale[None, :])
        if pad_to is not None and co < pad_to:                         # lane-dense pad
            wk = jnp.pad(wk, ((0, 0), (0, pad_to - co)))
            shift = jnp.pad(shift, (0, pad_to - co))
        return wk.astype(jnp.bfloat16), shift.reshape(1, -1).astype(jnp.float32)

    w1, s1 = fold(raw["w1"], raw["b1"], raw["bn1"])                    # (16*cin, 128)
    w2, s2 = fold(raw["w2"], raw["b2"], raw["bn2"], pad_to=128)        # (2048, 128)
    c2 = raw["w3"].shape[1]
    w3 = (jnp.zeros((128, 128), jnp.float32)
          .at[:c2, 0].set(raw["w3"][0, :, 0, 0])).astype(jnp.bfloat16)
    b3 = jnp.zeros((1, 128), jnp.float32).at[0, 0].set(raw["b3"][0])
    return dict(w1=w1, shift1=s1, w2=w2, shift2=s2, w3=w3, b3=b3)


# ---------------------------------------------------------------------------
# Pure-JAX f32 reference (eval-mode semantics of the PyTorch module)
# ---------------------------------------------------------------------------
def d_cnn_reference(x_nchw, raw):
    def conv(x, w, b, stride, pad):
        y = jax.lax.conv_general_dilated(
            x, w, (stride, stride), [(pad, pad), (pad, pad)],
            dimension_numbers=("NCHW", "OIHW", "NCHW"))
        return y + b[None, :, None, None]

    def bn(x, p):
        inv = p["gamma"] / jnp.sqrt(p["var"] + _BN_EPS)
        return ((x - p["mean"][None, :, None, None]) * inv[None, :, None, None]
                + p["beta"][None, :, None, None])

    def lrelu(x):
        return jnp.where(x > 0, x, 0.2 * x)

    h = lrelu(bn(conv(x_nchw, raw["w1"], raw["b1"], 2, 1), raw["bn1"]))
    h = lrelu(bn(conv(h, raw["w2"], raw["b2"], 2, 1), raw["bn2"]))
    h = jax.nn.sigmoid(conv(h, raw["w3"], raw["b3"], 1, 0))
    return h.reshape(-1)


if __name__ == "__main__":
    IN_CH, BATCH, SPATIAL = 32, 2, 16

    key = jax.random.PRNGKey(0)
    kx, kp = jax.random.split(key)
    x = jax.random.normal(kx, (BATCH, IN_CH, SPATIAL, SPATIAL), jnp.float32)
    raw = init_raw_params(kp, IN_CH)
    params = pack_params(raw)

    out = jax.jit(d_cnn_forward)(x, params)
    out = jax.block_until_ready(out)

    expected_len = BATCH * (SPATIAL // 4) * (SPATIAL // 4)   # two stride-2 convs, Cout=1
    assert out.shape == (expected_len,), out.shape
    assert bool(jnp.all(jnp.isfinite(out))), "non-finite output"
    assert bool(jnp.all((out >= 0.0) & (out <= 1.0))), "sigmoid output out of range"

    ref = d_cnn_reference(x, raw)
    max_err = float(jnp.max(jnp.abs(out - ref)))
    assert max_err < 3e-2, f"mismatch vs f32 reference: max abs err {max_err}"

    print("KERNEL_OK")
</pallas_src>

<mosaic_0001>
module attributes {stable_mosaic.version = 11 : i64} {
  func.func @_d_cnn_fused_kernel(%arg0: i32, %arg1: memref<1x64x512xbf16, #tpu.memory_space<vmem>>, %arg2: memref<512x128xbf16, #tpu.memory_space<vmem>>, %arg3: memref<1x128xf32, #tpu.memory_space<vmem>>, %arg4: memref<2048x128xbf16, #tpu.memory_space<vmem>>, %arg5: memref<1x128xf32, #tpu.memory_space<vmem>>, %arg6: memref<128x128xbf16, #tpu.memory_space<vmem>>, %arg7: memref<1x128xf32, #tpu.memory_space<vmem>>, %arg8: memref<1x16x128xf32, #tpu.memory_space<vmem>>, %arg9: memref<4x5x5x128xbf16, #tpu.memory_space<vmem>>) attributes {dimension_semantics = [#tpu.dimension_semantics<parallel>], iteration_bounds = array<i64: 2>, scalar_prefetch = 0 : i64, scratch_operands = 1 : i64, tpu.core_type = #tpu.core_type<tc>, window_params = [{transform_indices = @transform_0, window_bounds = array<i64: 1, 64, 512>}, {pipeline_mode = #tpu.pipeline_mode<synchronous>, transform_indices = @transform_1, window_bounds = array<i64: 512, 128>}, {pipeline_mode = #tpu.pipeline_mode<synchronous>, transform_indices = @transform_2, window_bounds = array<i64: 1, 128>}, {pipeline_mode = #tpu.pipeline_mode<synchronous>, transform_indices = @transform_3, window_bounds = array<i64: 2048, 128>}, {pipeline_mode = #tpu.pipeline_mode<synchronous>, transform_indices = @transform_4, window_bounds = array<i64: 1, 128>}, {pipeline_mode = #tpu.pipeline_mode<synchronous>, transform_indices = @transform_5, window_bounds = array<i64: 128, 128>}, {pipeline_mode = #tpu.pipeline_mode<synchronous>, transform_indices = @transform_6, window_bounds = array<i64: 1, 128>}, {transform_indices = @transform_7, window_bounds = array<i64: 1, 16, 128>}]} {
    %c0 = arith.constant 0 : index
    %c0_0 = arith.constant 0 : index
    %c0_1 = arith.constant 0 : index
    %0 = vector.load %arg1[%c0, %c0_0, %c0_1] : memref<1x64x512xbf16, #tpu.memory_space<vmem>>, vector<1x64x512xbf16>
    %1 = vector.shape_cast %0 : vector<1x64x512xbf16> to vector<64x512xbf16>
    %c0_2 = arith.constant 0 : index
    %c0_3 = arith.constant 0 : index
    %2 = vector.load %arg2[%c0_2, %c0_3] : memref<512x128xbf16, #tpu.memory_space<vmem>>, vector<512x128xbf16>
    %cst = arith.constant dense<0.000000e+00> : vector<64x128xf32>
    %3 = tpu.matmul %1, %2, %cst {dimension_numbers = #tpu.dot_dimension_numbers<[1], [0], [0], [1], [0, 0, 1, 1], [], []>} : vector<64x512xbf16>, vector<512x128xbf16>, vector<64x128xf32> -> vector<64x128xf32>
    %c0_4 = arith.constant 0 : index
    %c0_5 = arith.constant 0 : index
    %4 = vector.load %arg3[%c0_4, %c0_5] : memref<1x128xf32, #tpu.memory_space<vmem>>, vector<1x128xf32>
    %5 = vector.broadcast %4 : vector<1x128xf32> to vector<64x128xf32>
    %6 = arith.addf %3, %5 : vector<64x128xf32>
    %cst_6 = arith.constant 0.000000e+00 : f32
    %7 = vector.broadcast %cst_6 : f32 to vector<64x128xf32>
    %8 = arith.cmpf ogt, %6, %7 : vector<64x128xf32>
    %cst_7 = arith.constant 2.000000e-01 : f32
    %9 = vector.broadcast %cst_7 : f32 to vector<64x128xf32>
    %10 = arith.mulf %9, %6 : vector<64x128xf32>
    %11 = arith.select %8, %6, %10 : vector<64x128xi1>, vector<64x128xf32>
    %12 = arith.truncf %11 : vector<64x128xf32> to vector<64x128xbf16>
    %13 = vector.shape_cast %12 : vector<64x128xbf16> to vector<4x4x4x128xbf16>
    %14 = vector.extract_strided_slice %13 {offsets = [0, 0, 0, 0], sizes = [1, 4, 4, 128], strides = [1, 1, 1, 1]} : vector<4x4x4x128xbf16> to vector<1x4x4x128xbf16>
    %15 = vector.shape_cast %14 : vector<1x4x4x128xbf16> to vector<4x4x128xbf16>
    %c0_8 = arith.constant 0 : index
    %c1 = arith.constant 1 : index
    %c1_9 = arith.constant 1 : index
    %c0_10 = arith.constant 0 : index
    %16 = vector.load %arg9[%c0_8, %c1, %c1_9, %c0_10] : memref<4x5x5x128xbf16, #tpu.memory_space<vmem>>, vector<1x4x4x128xbf16>
    %17 = vector.shape_cast %16 : vector<1x4x4x128xbf16> to vector<4x4x128xbf16>
    %18 = vector.shape_cast %15 : vector<4x4x128xbf16> to vector<1x4x4x128xbf16>
    tpu.vector_store %arg9[%c0_8, %c1, %c1_9, %c0_10], %18 {strides = array<i32>} : memref<4x5x5x128xbf16, #tpu.memory_space<vmem>>, vector<1x4x4x128xbf16>,
    %19 = vector.extract_strided_slice %13 {offsets = [1, 0, 0, 0], sizes = [1, 4, 4, 128], strides = [1, 1, 1, 1]} : vector<4x4x4x128xbf16> to vector<1x4x4x128xbf16>
    %20 = vector.shape_cast %19 : vector<1x4x4x128xbf16> to vector<4x4x128xbf16>
    %c1_11 = arith.constant 1 : index
    %c1_12 = arith.constant 1 : index
    %c0_13 = arith.constant 0 : index
    %c0_14 = arith.constant 0 : index
    %21 = vector.load %arg9[%c1_11, %c1_12, %c0_13, %c0_14] : memref<4x5x5x128xbf16, #tpu.memory_space<vmem>>, vector<1x4x4x128xbf16>
    %22 = vector.shape_cast %21 : vector<1x4x4x128xbf16> to vector<4x4x128xbf16>
    %23 = vector.shape_cast %20 : vector<4x4x128xbf16> to vector<1x4x4x128xbf16>
    tpu.vector_store %arg9[%c1_11, %c1_12, %c0_13, %c0_14], %23 {strides = array<i32>} : memref<4x5x5x128xbf16, #tpu.memory_space<vmem>>, vector<1x4x4x128xbf16>,
    %24 = vector.extract_strided_slice %13 {offsets = [2, 0, 0, 0], sizes = [1, 4, 4, 128], strides = [1, 1, 1, 1]} : vector<4x4x4x128xbf16> to vector<1x4x4x128xbf16>
    %25 = vector.shape_cast %24 : vector<1x4x4x128xbf16> to vector<4x4x128xbf16>
    %c2 = arith.constant 2 : index
    %c0_15 = arith.constant 0 : index
    %c1_16 = arith.constant 1 : index
    %c0_17 = arith.constant 0 : index
    %26 = vector.load %arg9[%c2, %c0_15, %c1_16, %c0_17] : memref<4x5x5x128xbf16, #tpu.memory_space<vmem>>, vector<1x4x4x128xbf16>
    %27 = vector.shape_cast %26 : vector<1x4x4x128xbf16> to vector<4x4x128xbf16>
    %28 = vector.shape_cast %25 : vector<4x4x128xbf16> to vector<1x4x4x128xbf16>
    tpu.vector_store %arg9[%c2, %c0_15, %c1_16, %c0_17], %28 {strides = array<i32>} : memref<4x5x5x128xbf16, #tpu.memory_space<vmem>>, vector<1x4x4x128xbf16>,
    %29 = vector.extract_strided_slice %13 {offsets = [3, 0, 0, 0], sizes = [1, 4, 4, 128], strides = [1, 1, 1, 1]} : vector<4x4x4x128xbf16> to vector<1x4x4x128xbf16>
    %30 = vector.shape_cast %29 : vector<1x4x4x128xbf16> to vector<4x4x128xbf16>
    %c3 = arith.constant 3 : index
    %c0_18 = arith.constant 0 : index
    %c0_19 = arith.constant 0 : index
    %c0_20 = arith.constant 0 : index
    %31 = vector.load %arg9[%c3, %c0_18, %c0_19, %c0_20] : memref<4x5x5x128xbf16, #tpu.memory_space<vmem>>, vector<1x4x4x128xbf16>
    %32 = vector.shape_cast %31 : vector<1x4x4x128xbf16> to vector<4x4x128xbf16>
    %33 = vector.shape_cast %30 : vector<4x4x128xbf16> to vector<1x4x4x128xbf16>
    tpu.vector_store %arg9[%c3, %c0_18, %c0_19, %c0_20], %33 {strides = array<i32>} : memref<4x5x5x128xbf16, #tpu.memory_space<vmem>>, vector<1x4x4x128xbf16>,
    %cst_21 = arith.constant 0.000000e+00 : bf16
    %34 = vector.broadcast %cst_21 : bf16 to vector<1x5x128xbf16>
    %cst_22 = arith.constant 0.000000e+00 : bf16
    %35 = vector.broadcast %cst_22 : bf16 to vector<4x1x128xbf16>
    %c0_23 = arith.constant 0 : index
    %c0_24 = arith.constant 0 : index
    %c0_25 = arith.constant 0 : index
    %c0_26 = arith.constant 0 : index
    %36 = vector.load %arg9[%c0_23, %c0_24, %c0_25, %c0_26] : memref<4x5x5x128xbf16, #tpu.memory_space<vmem>>, vector<1x1x5x128xbf16>
    %37 = vector.shape_cast %36 : vector<1x1x5x128xbf16> to vector<1x5x128xbf16>
    %38 = vector.shape_cast %34 : vector<1x5x128xbf16> to vector<1x1x5x128xbf16>
    tpu.vector_store %arg9[%c0_23, %c0_24, %c0_25, %c0_26], %38 {strides = array<i32>} : memref<4x5x5x128xbf16, #tpu.memory_space<vmem>>, vector<1x1x5x128xbf16>,
    %c0_27 = arith.constant 0 : index
    %c1_28 = arith.constant 1 : index
    %c0_29 = arith.constant 0 : index
    %c0_30 = arith.constant 0 : index
    %39 = vector.load %arg9[%c0_27, %c1_28, %c0_29, %c0_30] : memref<4x5x5x128xbf16, #tpu.memory_space<vmem>>, vector<1x4x1x128xbf16>
    %40 = vector.shape_cast %39 : vector<1x4x1x128xbf16> to vector<4x1x128xbf16>
    %41 = vector.shape_cast %35 : vector<4x1x128xbf16> to vector<1x4x1x128xbf16>
    tpu.vector_store %arg9[%c0_27, %c1_28, %c0_29, %c0_30], %41 {strides = array<i32>} : memref<4x5x5x128xbf16, #tpu.memory_space<vmem>>, vector<1x4x1x128xbf16>,
    %c1_31 = arith.constant 1 : index
    %c0_32 = arith.constant 0 : index
    %c0_33 = arith.constant 0 : index
    %c0_34 = arith.constant 0 : index
    %42 = vector.load %arg9[%c1_31, %c0_32, %c0_33, %c0_34] : memref<4x5x5x128xbf16, #tpu.memory_space<vmem>>, vector<1x1x5x128xbf16>
    %43 = vector.shape_cast %42 : vector<1x1x5x128xbf16> to vector<1x5x128xbf16>
    %44 = vector.shape_cast %34 : vector<1x5x128xbf16> to vector<1x1x5x128xbf16>
    tpu.vector_store %arg9[%c1_31, %c0_32, %c0_33, %c0_34], %44 {strides = array<i32>} : memref<4x5x5x128xbf16, #tpu.memory_space<vmem>>, vector<1x1x5x128xbf16>,
    %c1_35 = arith.constant 1 : index
    %c1_36 = arith.constant 1 : index
    %c4 = arith.constant 4 : index
    %c0_37 = arith.constant 0 : index
    %45 = vector.load %arg9[%c1_35, %c1_36, %c4, %c0_37] : memref<4x5x5x128xbf16, #tpu.memory_space<vmem>>, vector<1x4x1x128xbf16>
    %46 = vector.shape_cast %45 : vector<1x4x1x128xbf16> to vector<4x1x128xbf16>
    %47 = vector.shape_cast %35 : vector<4x1x128xbf16> to vector<1x4x1x128xbf16>
    tpu.vector_store %arg9[%c1_35, %c1_36, %c4, %c0_37], %47 {strides = array<i32>} : memref<4x5x5x128xbf16, #tpu.memory_space<vmem>>, vector<1x4x1x128xbf16>,
    %c2_38 = arith.constant 2 : index
    %c4_39 = arith.constant 4 : index
    %c0_40 = arith.constant 0 : index
    %c0_41 = arith.constant 0 : index
    %48 = vector.load %arg9[%c2_38, %c4_39, %c0_40, %c0_41] : memref<4x5x5x128xbf16, #tpu.memory_space<vmem>>, vector<1x1x5x128xbf16>
    %49 = vector.shape_cast %48 : vector<1x1x5x128xbf16> to vector<1x5x128xbf16>
    %50 = vector.shape_cast %34 : vector<1x5x128xbf16> to vector<1x1x5x128xbf16>
    tpu.vector_store %arg9[%c2_38, %c4_39, %c0_40, %c0_41], %50 {strides = array<i32>} : memref<4x5x5x128xbf16, #tpu.memory_space<vmem>>, vector<1x1x5x128xbf16>,
    %c2_42 = arith.constant 2 : index
    %c0_43 = arith.constant 0 : index
    %c0_44 = arith.constant 0 : index
    %c0_45 = arith.constant 0 : index
    %51 = vector.load %arg9[%c2_42, %c0_43, %c0_44, %c0_45] : memref<4x5x5x128xbf16, #tpu.memory_space<vmem>>, vector<1x4x1x128xbf16>
    %52 = vector.shape_cast %51 : vector<1x4x1x128xbf16> to vector<4x1x128xbf16>
    %53 = vector.shape_cast %35 : vector<4x1x128xbf16> to vector<1x4x1x128xbf16>
    tpu.vector_store %arg9[%c2_42, %c0_43, %c0_44, %c0_45], %53 {strides = array<i32>} : memref<4x5x5x128xbf16, #tpu.memory_space<vmem>>, vector<1x4x1x128xbf16>,
    %c3_46 = arith.constant 3 : index
    %c4_47 = arith.constant 4 : index
    %c0_48 = arith.constant 0 : index
    %c0_49 = arith.constant 0 : index
    %54 = vector.load %arg9[%c3_46, %c4_47, %c0_48, %c0_49] : memref<4x5x5x128xbf16, #tpu.memory_space<vmem>>, vector<1x1x5x128xbf16>
    %55 = vector.shape_cast %54 : vector<1x1x5x128xbf16> to vector<1x5x128xbf16>
    %56 = vector.shape_cast %34 : vector<1x5x128xbf16> to vector<1x1x5x128xbf16>
    tpu.vector_store %arg9[%c3_46, %c4_47, %c0_48, %c0_49], %56 {strides = array<i32>} : memref<4x5x5x128xbf16, #tpu.memory_space<vmem>>, vector<1x1x5x128xbf16>,
    %c3_50 = arith.constant 3 : index
    %c0_51 = arith.constant 0 : index
    %c4_52 = arith.constant 4 : index
    %c0_53 = arith.constant 0 : index
    %57 = vector.load %arg9[%c3_50, %c0_51, %c4_52, %c0_53] : memref<4x5x5x128xbf16, #tpu.memory_space<vmem>>, vector<1x4x1x128xbf16>
    %58 = vector.shape_cast %57 : vector<1x4x1x128xbf16> to vector<4x1x128xbf16>
    %59 = vector.shape_cast %35 : vector<4x1x128xbf16> to vector<1x4x1x128xbf16>
    tpu.vector_store %arg9[%c3_50, %c0_51, %c4_52, %c0_53], %59 {strides = array<i32>} : memref<4x5x5x128xbf16, #tpu.memory_space<vmem>>, vector<1x4x1x128xbf16>,
    %c0_54 = arith.constant 0 : index
    %c0_55 = arith.constant 0 : index
    %c0_56 = arith.constant 0 : index
    %c0_57 = arith.constant 0 : index
    %60 = vector.load %arg9[%c0_54, %c0_55, %c0_56, %c0_57] : memref<4x5x5x128xbf16, #tpu.memory_space<vmem>>, vector<1x4x4x128xbf16>
    %61 = vector.shape_cast %60 : vector<1x4x4x128xbf16> to vector<4x4x128xbf16>
    %c1_58 = arith.constant 1 : index
    %c0_59 = arith.constant 0 : index
    %c0_60 = arith.constant 0 : index
    %c0_61 = arith.constant 0 : index
    %62 = vector.load %arg9[%c1_58, %c0_59, %c0_60, %c0_61] : memref<4x5x5x128xbf16, #tpu.memory_space<vmem>>, vector<1x4x4x128xbf16>
    %63 = vector.shape_cast %62 : vector<1x4x4x128xbf16> to vector<4x4x128xbf16>
    %c0_62 = arith.constant 0 : index
    %c0_63 = arith.constant 0 : index
    %c1_64 = arith.constant 1 : index
    %c0_65 = arith.constant 0 : index
    %64 = vector.load %arg9[%c0_62, %c0_63, %c1_64, %c0_65] : memref<4x5x5x128xbf16, #tpu.memory_space<vmem>>, vector<1x4x4x128xbf16>
    %65 = vector.shape_cast %64 : vector<1x4x4x128xbf16> to vector<4x4x128xbf16>
    %c1_66 = arith.constant 1 : index
    %c0_67 = arith.constant 0 : index
    %c1_68 = arith.constant 1 : index
    %c0_69 = arith.constant 0 : index
    %66 = vector.load %arg9[%c1_66, %c0_67, %c1_68, %c0_69] : memref<4x5x5x128xbf16, #tpu.memory_space<vmem>>, vector<1x4x4x128xbf16>
    %67 = vector.shape_cast %66 : vector<1x4x4x128xbf16> to vector<4x4x128xbf16>
    %c2_70 = arith.constant 2 : index
    %c0_71 = arith.constant 0 : index
    %c0_72 = arith.constant 0 : index
    %c0_73 = arith.constant 0 : index
    %68 = vector.load %arg9[%c2_70, %c0_71, %c0_72, %c0_73] : memref<4x5x5x128xbf16, #tpu.memory_space<vmem>>, vector<1x4x4x128xbf16>
    %69 = vector.shape_cast %68 : vector<1x4x4x128xbf16> to vector<4x4x128xbf16>
    %c3_74 = arith.constant 3 : index
    %c0_75 = arith.constant 0 : index
    %c0_76 = arith.constant 0 : index
    %c0_77 = arith.constant 0 : index
    %70 = vector.load %arg9[%c3_74, %c0_75, %c0_76, %c0_77] : memref<4x5x5x128xbf16, #tpu.memory_space<vmem>>, vector<1x4x4x128xbf16>
    %71 = vector.shape_cast %70 : vector<1x4x4x128xbf16> to vector<4x4x128xbf16>
    %c2_78 = arith.constant 2 : index
    %c0_79 = arith.constant 0 : index
    %c1_80 = arith.constant 1 : index
    %c0_81 = arith.constant 0 : index
    %72 = vector.load %arg9[%c2_78, %c0_79, %c1_80, %c0_81] : memref<4x5x5x128xbf16, #tpu.memory_space<vmem>>, vector<1x4x4x128xbf16>
    %73 = vector.shape_cast %72 : vector<1x4x4x128xbf16> to vector<4x4x128xbf16>
    %c3_82 = arith.constant 3 : index
    %c0_83 = arith.constant 0 : index
    %c1_84 = arith.constant 1 : index
    %c0_85 = arith.constant 0 : index
    %74 = vector.load %arg9[%c3_82, %c0_83, %c1_84, %c0_85] : memref<4x5x5x128xbf16, #tpu.memory_space<vmem>>, vector<1x4x4x128xbf16>
    %75 = vector.shape_cast %74 : vector<1x4x4x128xbf16> to vector<4x4x128xbf16>
    %c0_86 = arith.constant 0 : index
    %c1_87 = arith.constant 1 : index
    %c0_88 = arith.constant 0 : index
    %c0_89 = arith.constant 0 : index
    %76 = vector.load %arg9[%c0_86, %c1_87, %c0_88, %c0_89] : memref<4x5x5x128xbf16, #tpu.memory_space<vmem>>, vector<1x4x4x128xbf16>
    %77 = vector.shape_cast %76 : vector<1x4x4x128xbf16> to vector<4x4x128xbf16>
    %c1_90 = arith.constant 1 : index
    %c1_91 = arith.constant 1 : index
    %c0_92 = arith.constant 0 : index
    %c0_93 = arith.constant 0 : index
    %78 = vector.load %arg9[%c1_90, %c1_91, %c0_92, %c0_93] : memref<4x5x5x128xbf16, #tpu.memory_space<vmem>>, vector<1x4x4x128xbf16>
    %79 = vector.shape_cast %78 : vector<1x4x4x128xbf16> to vector<4x4x128xbf16>
    %c0_94 = arith.constant 0 : index
    %c1_95 = arith.constant 1 : index
    %c1_96 = arith.constant 1 : index
    %c0_97 = arith.constant 0 : index
    %80 = vector.load %arg9[%c0_94, %c1_95, %c1_96, %c0_97] : memref<4x5x5x128xbf16, #tpu.memory_space<vmem>>, vector<1x4x4x128xbf16>
    %81 = vector.shape_cast %80 : vector<1x4x4x128xbf16> to vector<4x4x128xbf16>
    %c1_98 = arith.constant 1 : index
    %c1_99 = arith.constant 1 : index
    %c1_100 = arith.constant 1 : index
    %c0_101 = arith.constant 0 : index
    %82 = vector.load %arg9[%c1_98, %c1_99, %c1_100, %c0_101] : memref<4x5x5x128xbf16, #tpu.memory_space<vmem>>, vector<1x4x4x128xbf16>
    %83 = vector.shape_cast %82 : vector<1x4x4x128xbf16> to vector<4x4x128xbf16>
    %c2_102 = arith.constant 2 : index
    %c1_103 = arith.constant 1 : index
    %c0_104 = arith.constant 0 : index
    %c0_105 = arith.constant 0 : index
    %84 = vector.load %arg9[%c2_102, %c1_103, %c0_104, %c0_105] : memref<4x5x5x128xbf16, #tpu.memory_space<vmem>>, vector<1x4x4x128xbf16>
    %85 = vector.shape_cast %84 : vector<1x4x4x128xbf16> to vector<4x4x128xbf16>
    %c3_106 = arith.constant 3 : index
    %c1_107 = arith.constant 1 : index
    %c0_108 = arith.constant 0 : index
    %c0_109 = arith.constant 0 : index
    %86 = vector.load %arg9[%c3_106, %c1_107, %c0_108, %c0_109] : memref<4x5x5x128xbf16, #tpu.memory_space<vmem>>, vector<1x4x4x128xbf16>
    %87 = vector.shape_cast %86 : vector<1x4x4x128xbf16> to vector<4x4x128xbf16>
    %c2_110 = arith.constant 2 : index
    %c1_111 = arith.constant 1 : index
    %c1_112 = arith.constant 1 : index
    %c0_113 = arith.constant 0 : index
    %88 = vector.load %arg9[%c2_110, %c1_111, %c1_112, %c0_113] : memref<4x5x5x128xbf16, #tpu.memory_space<vmem>>, vector<1x4x4x128xbf16>
    %89 = vector.shape_cast %88 : vector<1x4x4x128xbf16> to vector<4x4x128xbf16>
    %c3_114 = arith.constant 3 : index
    %c1_115 = arith.constant 1 : index
    %c1_116 = arith.constant 1 : index
    %c0_117 = arith.constant 0 : index
    %90 = vector.load %arg9[%c3_114, %c1_115, %c1_116, %c0_117] : memref<4x5x5x128xbf16, #tpu.memory_space<vmem>>, vector<1x4x4x128xbf16>
    %91 = vector.shape_cast %90 : vector<1x4x4x128xbf16> to vector<4x4x128xbf16>
    %92 = tpu.concatenate %61, %63, %65, %67, %69, %71, %73, %75, %77, %79, %81, %83, %85, %87, %89, %91 in 2 : vector<4x4x128xbf16>, vector<4x4x128xbf16>, vector<4x4x128xbf16>, vector<4x4x128xbf16>, vector<4x4x128xbf16>, vector<4x4x128xbf16>, vector<4x4x128xbf16>, vector<4x4x128xbf16>, vector<4x4x128xbf16>, vector<4x4x128xbf16>, vector<4x4x128xbf16>, vector<4x4x128xbf16>, vector<4x4x128xbf16>, vector<4x4x128xbf16>, vector<4x4x128xbf16>, vector<4x4x128xbf16> -> vector<4x4x2048xbf16>
    %93 = vector.shape_cast %92 : vector<4x4x2048xbf16> to vector<16x2048xbf16>
    %c0_118 = arith.constant 0 : index
    %c0_119 = arith.constant 0 : index
    %94 = vector.load %arg4[%c0_118, %c0_119] : memref<2048x128xbf16, #tpu.memory_space<vmem>>, vector<2048x128xbf16>
    %cst_120 = arith.constant dense<0.000000e+00> : vector<16x128xf32>
    %95 = tpu.matmul %93, %94, %cst_120 {dimension_numbers = #tpu.dot_dimension_numbers<[1], [0], [0], [1], [0, 0, 1, 1], [], []>} : vector<16x2048xbf16>, vector<2048x128xbf16>, vector<16x128xf32> -> vector<16x128xf32>
    %c0_121 = arith.constant 0 : index
    %c0_122 = arith.constant 0 : index
    %96 = vector.load %arg5[%c0_121, %c0_122] : memref<1x128xf32, #tpu.memory_space<vmem>>, vector<1x128xf32>
    %97 = vector.broadcast %96 : vector<1x128xf32> to vector<16x128xf32>
    %98 = arith.addf %95, %97 : vector<16x128xf32>
    %cst_123 = arith.constant 0.000000e+00 : f32
    %99 = vector.broadcast %cst_123 : f32 to vector<16x128xf32>
    %100 = arith.cmpf ogt, %98, %99 : vector<16x128xf32>
    %cst_124 = arith.constant 2.000000e-01 : f32
    %101 = vector.broadcast %cst_124 : f32 to vector<16x128xf32>
    %102 = arith.mulf %101, %98 : vector<16x128xf32>
    %103 = arith.select %100, %98, %102 : vector<16x128xi1>, vector<16x128xf32>
    %104 = arith.truncf %103 : vector<16x128xf32> to vector<16x128xbf16>
    %c0_125 = arith.constant 0 : index
    %c0_126 = arith.constant 0 : index
    %105 = vector.load %arg6[%c0_125, %c0_126] : memref<128x128xbf16, #tpu.memory_space<vmem>>, vector<128x128xbf16>
    %cst_127 = arith.constant dense<0.000000e+00> : vector<16x128xf32>
    %106 = tpu.matmul %104, %105, %cst_127 {dimension_numbers = #tpu.dot_dimension_numbers<[1], [0], [0], [1], [0, 0, 1, 1], [], []>} : vector<16x128xbf16>, vector<128x128xbf16>, vector<16x128xf32> -> vector<16x128xf32>
    %c0_128 = arith.constant 0 : index
    %c0_129 = arith.constant 0 : index
    %107 = vector.load %arg7[%c0_128, %c0_129] : memref<1x128xf32, #tpu.memory_space<vmem>>, vector<1x128xf32>
    %108 = vector.broadcast %107 : vector<1x128xf32> to vector<16x128xf32>
    %109 = arith.addf %106, %108 : vector<16x128xf32>
    %110 = math.absf %109 : vector<16x128xf32>
    %cst_130 = arith.constant 0.000000e+00 : f32
    %111 = vector.broadcast %cst_130 : f32 to vector<16x128xf32>
    %112 = arith.subf %111, %110 : vector<16x128xf32>
    %113 = math.exp %112 : vector<16x128xf32>
    %cst_131 = arith.constant 0.000000e+00 : f32
    %114 = vector.broadcast %cst_131 : f32 to vector<16x128xf32>
    %115 = arith.cmpf oge, %109, %114 : vector<16x128xf32>
    %cst_132 = arith.constant 1.000000e+00 : f32
    %116 = vector.broadcast %cst_132 : f32 to vector<16x128xf32>
    %117 = arith.addf %116, %113 : vector<16x128xf32>
    %cst_133 = arith.constant 1.000000e+00 : f32
    %118 = vector.broadcast %cst_133 : f32 to vector<16x128xf32>
    %119 = arith.divf %118, %117 : vector<16x128xf32>
    %cst_134 = arith.constant 1.000000e+00 : f32
    %120 = vector.broadcast %cst_134 : f32 to vector<16x128xf32>
    %121 = arith.addf %120, %113 : vector<16x128xf32>
    %122 = arith.divf %113, %121 : vector<16x128xf32>
    %123 = arith.select %115, %119, %122 : vector<16x128xi1>, vector<16x128xf32>
    %c0_135 = arith.constant 0 : index
    %c0_136 = arith.constant 0 : index
    %c0_137 = arith.constant 0 : index
    %124 = vector.load %arg8[%c0_135, %c0_136, %c0_137] : memref<1x16x128xf32, #tpu.memory_space<vmem>>, vector<1x16x128xf32>
    %125 = vector.shape_cast %124 : vector<1x16x128xf32> to vector<16x128xf32>
    %126 = vector.shape_cast %123 : vector<16x128xf32> to vector<1x16x128xf32>
    tpu.vector_store %arg8[%c0_135, %c0_136, %c0_137], %126 {strides = array<i32>} : memref<1x16x128xf32, #tpu.memory_space<vmem>>, vector<1x16x128xf32>,
    return
  }
  func.func @transform_0(%arg0: i32) -> (i32, i32, i32) {
    %c0_i32 = arith.constant 0 : i32
    %c0_i32_0 = arith.constant 0 : i32
    %c0_i32_1 = arith.constant 0 : i32
    return %arg0, %c0_i32, %c0_i32_0 : i32, i32, i32
  }
  func.func @transform_1(%arg0: i32) -> (i32, i32) {
    %c0_i32 = arith.constant 0 : i32
    %c0_i32_0 = arith.constant 0 : i32
    %c0_i32_1 = arith.constant 0 : i32
    return %c0_i32, %c0_i32_0 : i32, i32
  }
  func.func @transform_2(%arg0: i32) -> (i32, i32) {
    %c0_i32 = arith.constant 0 : i32
    %c0_i32_0 = arith.constant 0 : i32
    %c0_i32_1 = arith.constant 0 : i32
    return %c0_i32, %c0_i32_0 : i32, i32
  }
  func.func @transform_3(%arg0: i32) -> (i32, i32) {
    %c0_i32 = arith.constant 0 : i32
    %c0_i32_0 = arith.constant 0 : i32
    %c0_i32_1 = arith.constant 0 : i32
    return %c0_i32, %c0_i32_0 : i32, i32
  }
  func.func @transform_4(%arg0: i32) -> (i32, i32) {
    %c0_i32 = arith.constant 0 : i32
    %c0_i32_0 = arith.constant 0 : i32
    %c0_i32_1 = arith.constant 0 : i32
    return %c0_i32, %c0_i32_0 : i32, i32
  }
  func.func @transform_5(%arg0: i32) -> (i32, i32) {
    %c0_i32 = arith.constant 0 : i32
    %c0_i32_0 = arith.constant 0 : i32
    %c0_i32_1 = arith.constant 0 : i32
    return %c0_i32, %c0_i32_0 : i32, i32
  }
  func.func @transform_6(%arg0: i32) -> (i32, i32) {
    %c0_i32 = arith.constant 0 : i32
    %c0_i32_0 = arith.constant 0 : i32
    %c0_i32_1 = arith.constant 0 : i32
    return %c0_i32, %c0_i32_0 : i32, i32
  }
  func.func @transform_7(%arg0: i32) -> (i32, i32, i32) {
    %c0_i32 = arith.constant 0 : i32
    %c0_i32_0 = arith.constant 0 : i32
    %c0_i32_1 = arith.constant 0 : i32
    return %arg0, %c0_i32, %c0_i32_0 : i32, i32, i32
  }
}

</mosaic_0001>

<bundles_post_ra>
// kernel: squeeze.1
= control target key start
LH: loop header
LB: loop body
LE: loop exit
PB: predicated region body
PF: predicated region fallthrough
CT: control target
= control target key end

     0   :  { %s80_s0 = inlined_call_operand.vmem [shape: f32[2,16], index: 0, kind: input, shape index: {}]   ;;  %s81_s1 = inlined_call_operand.hbm [shape: f32[32], index: 1, kind: output, shape index: {}]  }
   0x1   :  { %v5_v0 = vld [vmem:[%s80_s0] sm:$0x3] }
   0x2   :  { %2 = vsyncpa [#allocation1], 0  ;;  %6 = vst [vmem:[#allocation3] sm:$0x3] %v5_v0  ;;  %vm8_vm0 = vcmask 130048   ;;  %s62_s0 = smov 16  }
   0x3   :  { %vm14_vm1 = vcmask 261248   ;;  %s63_s8 = smov [#allocation0]   ;;  %s27_s1 = sshll.u32 %s81_s1, 4  ;;  %s28_s1 = int_to_ptr.hbm [resolvable:$true] %s27_s1 }
   0x4   :  { %s25_s9 = sshll.u32 %s63_s8, 4  ;;  %s26_s9 = int_to_ptr.vmem [resolvable:$true] %s25_s9 }
   0x9   :  { %v11_v1 = vld [vmem:[#allocation3 + $0x1] sm:$0x1]   ;;  %v7_v2 = vld [vmem:[#allocation3] sm:$0x1]  }
   0xa   :  { %12 = vrot.lane.b32.xlu0 %v11_v1, %s62_s0  ;;  %9 = vst.msk [vmem:[#allocation2] sm:$0x1] %vm8_vm0, %v7_v2  }
  0x7c   :  { %v13_v3 = vpop.permute.xlu0 %12  }
  0x7d   :  { %15 = vst.msk [vmem:[#allocation2] sm:$0x1] %vm14_vm1, %v13_v3  }
  0x84   :  { %v18_v4 = vld [vmem:[#allocation2] sm:$0x1] }
  0x85   :  { %21 = vst [vmem:[#allocation0] sm:$0x1] %v18_v4 }
  0x86   :  { %30 = dma.vmem_to_hbm [thread:$0]  %s26_s9, 16, %s28_s1, [#allocation1]  }
  0x87   :  { %60 = dma.done.wait [#allocation1], 16  }
  0x88   :  { %61 = vsyncadd [#allocation1], 4294967280 }
  0x89   :  { %33 = vsyncpa [#allocation1], 1 }

// kernel: d_cnn_forward.1
= control target key start
LH: loop header
LB: loop body
LE: loop exit
PB: predicated region body
PF: predicated region fallthrough
CT: control target
= control target key end

     0   :  { %s4112_s24 = smov 0   ;;  %s5035_s0 = inlined_call_operand.vmem [shape: bf16[2,64,512], index: 0, kind: input, shape index: {}]   ;;  %s5036_s1 = inlined_call_operand.vmem [shape: bf16[512,128], index: 1, kind: input, shape index: {}]   ;;  %s5037_s2 = inlined_call_operand.vmem [shape: f32[1,128], index: 2, kind: input, shape index: {}]   ;;  %s5038_s3 = inlined_call_operand.vmem [shape: bf16[2048,128], index: 3, kind: input, shape index: {}]   ;;  %s5039_s4 = inlined_call_operand.vmem [shape: f32[1,128], index: 4, kind: input, shape index: {}]   ;;  %s5040_s5 = inlined_call_operand.vmem [shape: bf16[128,128], index: 5, kind: input, shape index: {}]   ;;  %s5041_s6 = inlined_call_operand.vmem [shape: f32[1,128], index: 6, kind: input, shape index: {}]   ;;  %s5042_s7 = inlined_call_operand.vmem [shape: f32[2,16,128], index: 7, kind: output, shape index: {}]  }
   0x1 LB: > { %s3112_s25 = sadd.s32 4294967295, %s4070_s24   ;;  %p3116_p0 = scmp.ge.s32.totalorder %s4070_s24, 1  ;;  %s4070_s24 = sphi %s4112_s24, %s17_s24  }
   0x2   : > { %p237_p1 = scmp.lt.s32.totalorder %s4070_s24, 3 }
   0x4   : > { %p238_p2 = pnand %p3116_p0, %p237_p1 }
   0x5   : > { %p269_p3 = scmp.lt.s32.totalorder (!%p238_p2), %s3112_s25, 1 }
   0x6   : > { %241 = sbr.rel (%p238_p2) target bundleno = 667 (0x29b), region = 48 }
   0xb   : > { %v3884_v0 = vld [vmem:[%s5036_s1 + $0x38] sm:$0xff]  ;;  %v3883_v4 = vld [vmem:[%s5036_s1 + $0x30] sm:$0xff]  ;;  %v3882_v8 = vld [vmem:[%s5036_s1 + $0x28] sm:$0xff]  ;;  %s5052_s25 = smov (!%p269_p3, %s3112_s25), 1  ;;  %vm979_vm0 = vsmask.f32 2304 }
   0xc   : > { %v3892_v1 = vld [vmem:[%s5036_s1 + $0x78] sm:$0xff]  ;;  %636 = vmatpush.bf16.msra.mxu0 %v3884_v0  ;;  %v3891_v5 = vld [vmem:[%s5036_s1 + $0x70] sm:$0xff]  ;;  %v3890_v9 = vld [vmem:[%s5036_s1 + $0x68] sm:$0xff]  ;;  %s3859_s9 = sshll.u32 %s5052_s25, 7  ;;  %vm1003_vm1 = vcmask 1042434   ;;  %vm800_vm4 = vcmask 1041408  }
   0xd   : > { %v3900_v2 = vld [vmem:[%s5036_s1 + $0xb8] sm:$0xff]  ;;  %665 = vmatpush.bf16.msra.mxu1 %v3892_v1  ;;  %v3899_v6 = vld [vmem:[%s5036_s1 + $0xb0] sm:$0xff]  ;;  %v3898_v10 = vld [vmem:[%s5036_s1 + $0xa8] sm:$0xff]  ;;  %s4208_s16 = scalar_lea.vmem %s5035_s0, %s3859_s9  ;;  %vm804_vm5 = vcmask 1043458   ;;  %vm901_vm7 = vsmask.f32 2306 }
   0xe   : > { %v3908_v3 = vld [vmem:[%s5036_s1 + $0xf8] sm:$0xff]  ;;  %694 = vmatpush.bf16.msra.mxu2 %v3900_v2  ;;  %v3907_v7 = vld [vmem:[%s5036_s1 + $0xf0] sm:$0xff]  ;;  %v3906_v11 = vld [vmem:[%s5036_s1 + $0xe8] sm:$0xff]  ;;  %vm900_vm8 = vcmask 1042432   ;;  %vm984_vm11 = vcmask 1040384   ;;  %s3860_s13 = sshll.u32 %s5052_s25, 4 }
   0xf   : > { %723 = vmatpush.bf16.msra.mxu3 %v3908_v3  ;;  %v3881_v12 = vld [vmem:[%s5036_s1 + $0x20] sm:$0xff]  ;;  %v3880_v16 = vld [vmem:[%s5036_s1 + $0x18] sm:$0xff]  ;;  %v3879_v20 = vld [vmem:[%s5036_s1 + $0x10] sm:$0xff]  ;;  %vm985_vm12 = vsmask.f32 256 }
  0x10   : > { %637 = vmatpush.bf16.msra.mxu0 %v3883_v4  ;;  %v3889_v13 = vld [vmem:[%s5036_s1 + $0x60] sm:$0xff]  ;;  %v3888_v17 = vld [vmem:[%s5036_s1 + $0x58] sm:$0xff]  ;;  %v3887_v21 = vld [vmem:[%s5036_s1 + $0x50] sm:$0xff] }
  0x11   : > { %666 = vmatpush.bf16.msra.mxu1 %v3891_v5  ;;  %v3897_v14 = vld [vmem:[%s5036_s1 + $0xa0] sm:$0xff]  ;;  %v3896_v18 = vld [vmem:[%s5036_s1 + $0x98] sm:$0xff]  ;;  %v3895_v22 = vld [vmem:[%s5036_s1 + $0x90] sm:$0xff] }
  0x12   : > { %695 = vmatpush.bf16.msra.mxu2 %v3899_v6  ;;  %v3905_v15 = vld [vmem:[%s5036_s1 + $0xe0] sm:$0xff]  ;;  %v3904_v19 = vld [vmem:[%s5036_s1 + $0xd8] sm:$0xff]  ;;  %v3903_v23 = vld [vmem:[%s5036_s1 + $0xd0] sm:$0xff] }
  0x13   : > { %724 = vmatpush.bf16.msra.mxu3 %v3907_v7  ;;  %v3878_v24 = vld [vmem:[%s5036_s1 + $0x8] sm:$0xff]  ;;  %v3877_v28 = vld [vmem:[%s5036_s1] sm:$0xff]  ;;  %v3863_v33 = vld [vmem:[%s4208_s16 + $0xc] sm:$0xf0] }
  0x14   : > { %638 = vmatpush.bf16.msra.mxu0 %v3882_v8  ;;  %v3886_v25 = vld [vmem:[%s5036_s1 + $0x48] sm:$0xff]  ;;  %v3885_v29 = vld [vmem:[%s5036_s1 + $0x40] sm:$0xff]  ;;  %v3125_v35 = vld [vmem:[%s4208_s16 + $0x10] sm:$0xf0] }
  0x15   : > { %667 = vmatpush.bf16.msra.mxu1 %v3890_v9  ;;  %v3894_v26 = vld [vmem:[%s5036_s1 + $0x88] sm:$0xff]  ;;  %v3893_v30 = vld [vmem:[%s5036_s1 + $0x80] sm:$0xff]  ;;  %v3864_v37 = vld [vmem:[%s4208_s16 + $0x14] sm:$0xf0] }
  0x16   : > { %696 = vmatpush.bf16.msra.mxu2 %v3898_v10  ;;  %v3902_v27 = vld [vmem:[%s5036_s1 + $0xc8] sm:$0xff]  ;;  %v3901_v31 = vld [vmem:[%s5036_s1 + $0xc0] sm:$0xff]  ;;  %v3133_v39 = vld [vmem:[%s4208_s16 + $0x18] sm:$0xf0] }
  0x17   : > { %725 = vmatpush.bf16.msra.mxu3 %v3906_v11  ;;  %v3123_v32 = vld [vmem:[%s4208_s16] sm:$0xf]  ;;  %v3861_v34 = vld [vmem:[%s4208_s16 + $0x4] sm:$0xf]  ;;  %v3131_v36 = vld [vmem:[%s4208_s16 + $0x8] sm:$0xf] }
  0x18   : > { %639 = vmatpush.bf16.msra.mxu0 %v3881_v12  ;;  %v3862_v38 = vld [vmem:[%s4208_s16 + $0xc] sm:$0xf]  ;;  %v3124_v40 = vor.u32 %v3863_v33, %v3123_v32  ;;  %v3128_v41 = vor.u32 %v3861_v34, %v3125_v35  ;;  %v3132_v42 = vor.u32 %v3864_v37, %v3131_v36  ;;  %v3139_v44 = vld [vmem:[%s4208_s16 + $0x20] sm:$0xf]  ;;  %v3867_v45 = vld [vmem:[%s4208_s16 + $0x2c] sm:$0xf0] }
  0x19   : > { %668 = vmatpush.bf16.msra.mxu1 %v3889_v13  ;;  %v3136_v43 = vor.u32 %v3862_v38, %v3133_v39  ;;  %v3865_v46 = vld [vmem:[%s4208_s16 + $0x24] sm:$0xf]  ;;  %v3141_v47 = vld [vmem:[%s4208_s16 + $0x30] sm:$0xf0]  ;;  %v3147_v48 = vld [vmem:[%s4208_s16 + $0x28] sm:$0xf]  ;;  %v3140_v52 = vor.u32 %v3867_v45, %v3139_v44 }
  0x1a   : > { %697 = vmatpush.bf16.msra.mxu2 %v3897_v14  ;;  %v3868_v49 = vld [vmem:[%s4208_s16 + $0x34] sm:$0xf0]  ;;  %v3866_v50 = vld [vmem:[%s4208_s16 + $0x2c] sm:$0xf]  ;;  %v3149_v51 = vld [vmem:[%s4208_s16 + $0x38] sm:$0xf0]  ;;  %v3144_v53 = vor.u32 %v3865_v46, %v3141_v47 }
  0x1b   : > { %726 = vmatpush.bf16.msra.mxu3 %v3905_v15  ;;  %v3148_v54 = vor.u32 %v3868_v49, %v3147_v48  ;;  %v3152_v55 = vor.u32 %v3866_v50, %v3149_v51  ;;  %v3155_v56 = vld [vmem:[%s4208_s16 + $0x40] sm:$0xf]  ;;  %v3871_v57 = vld [vmem:[%s4208_s16 + $0x4c] sm:$0xf0]  ;;  %v3869_v58 = vld [vmem:[%s4208_s16 + $0x44] sm:$0xf] }
  0x1c   : > { %640 = vmatpush.bf16.msra.mxu0 %v3880_v16  ;;  %v3157_v59 = vld [vmem:[%s4208_s16 + $0x50] sm:$0xf0]  ;;  %v3163_v60 = vld [vmem:[%s4208_s16 + $0x48] sm:$0xf]  ;;  %v3872_v61 = vld [vmem:[%s4208_s16 + $0x54] sm:$0xf0]  ;;  %v3156_v0 = vor.u32 %v3871_v57, %v3155_v56 }
  0x1d   : > { %669 = vmatpush.bf16.msra.mxu1 %v3888_v17  ;;  %v3870_v62 = vld [vmem:[%s4208_s16 + $0x4c] sm:$0xf]  ;;  %v3165_v63 = vld [vmem:[%s4208_s16 + $0x58] sm:$0xf0]  ;;  %v3160_v1 = vor.u32 %v3869_v58, %v3157_v59  ;;  %v3164_v2 = vor.u32 %v3872_v61, %v3163_v60  ;;  %v3179_v4 = vld [vmem:[%s4208_s16 + $0x68] sm:$0xf] }
  0x1e   : > { %698 = vmatpush.bf16.msra.mxu2 %v3896_v18  ;;  %v3168_v3 = vor.u32 %v3870_v62, %v3165_v63  ;;  %v3171_v5 = vld [vmem:[%s4208_s16 + $0x60] sm:$0xf]  ;;  %v3875_v6 = vld [vmem:[%s4208_s16 + $0x6c] sm:$0xf0]  ;;  %v3873_v7 = vld [vmem:[%s4208_s16 + $0x64] sm:$0xf] }
  0x1f   : > { %727 = vmatpush.bf16.msra.mxu3 %v3904_v19  ;;  %v3173_v8 = vld [vmem:[%s4208_s16 + $0x70] sm:$0xf0]  ;;  %v3876_v9 = vld [vmem:[%s4208_s16 + $0x74] sm:$0xf0]  ;;  %v3874_v10 = vld [vmem:[%s4208_s16 + $0x6c] sm:$0xf]  ;;  %v3172_v12 = vor.u32 %v3875_v6, %v3171_v5 }
  0x20   : > { %641 = vmatpush.bf16.msra.mxu0 %v3879_v20  ;;  %v3181_v11 = vld [vmem:[%s4208_s16 + $0x78] sm:$0xf0]  ;;  %v3176_v13 = vor.u32 %v3873_v7, %v3173_v8  ;;  %v3180_v14 = vor.u32 %v3876_v9, %v3179_v4  ;;  %v4263_v16 = vld [vmem:[%s5037_s2] ss:$0 sm:$0xff]  ;;  %vm4279_vm2 = vmand %vm1003_vm1, %vm979_vm0  ;;  %vm1502_vm1 = vcmask 1045508   ;;  %s278_s16 = scalar_lea.vmem %s5042_s7, %s3860_s13 }
  0x21   : > { %670 = vmatpush.bf16.msra.mxu1 %v3887_v21  ;;  %v3184_v15 = vor.u32 %v3874_v10, %v3181_v11  ;;  %v3916_v20 = vld [vmem:[%s5038_s3 + $0x38] sm:$0xff]  ;;  %v3915_v37 = vld [vmem:[%s5038_s3 + $0x30] sm:$0xff]  ;;  %v3914_v44 = vld [vmem:[%s5038_s3 + $0x28] sm:$0xff] }
  0x22   : > { %699 = vmatpush.bf16.msra.mxu2 %v3895_v22  ;;  %v3924_v21 = vld [vmem:[%s5038_s3 + $0x78] sm:$0xff]  ;;  %v3923_v38 = vld [vmem:[%s5038_s3 + $0x70] sm:$0xff]  ;;  %v3922_v45 = vld [vmem:[%s5038_s3 + $0x68] sm:$0xff] }
  0x23   : > { %728 = vmatpush.bf16.msra.mxu3 %v3903_v23  ;;  %v3932_v22 = vld [vmem:[%s5038_s3 + $0xb8] sm:$0xff]  ;;  %v3931_v39 = vld [vmem:[%s5038_s3 + $0xb0] sm:$0xff]  ;;  %v3930_v46 = vld [vmem:[%s5038_s3 + $0xa8] sm:$0xff] }
  0x24   : > { %642 = vmatpush.bf16.msra.mxu0 %v3878_v24  ;;  %v3940_v23 = vld [vmem:[%s5038_s3 + $0xf8] sm:$0xff]  ;;  %v3938_v50 = vld [vmem:[%s5038_s3 + $0xe8] sm:$0xff]  ;;  %vm4324_vm10 = vmand %vm900_vm8, %vm901_vm7 }
  0x25   : > { %671 = vmatpush.bf16.msra.mxu1 %v3886_v25  ;;  %v1014_v58 = vld [vmem:[#allocation2 + $0x24] sm:$0x4]  ;;  %vm4357_vm14 = vmand %vm900_vm8, %vm979_vm0 }
  0x26   : > { %700 = vmatpush.bf16.msra.mxu2 %v3894_v26  ;;  %v1005_v26 = vld [vmem:[#allocation2 + $0x18] sm:$0x4]  ;;  %v1015_v62 = vsel %vm4279_vm2, 0, %v1014_v58  ;;  %vm4364_vm15 = vmand %vm984_vm11, %vm985_vm12 }
  0x27   : > { %729 = vmatpush.bf16.msra.mxu3 %v3902_v27  ;;  %v1006_v27 = vsel %vm4279_vm2, 0, %v1005_v26  ;;  %1016 = vst [vmem:[#allocation2 + $0x24] sm:$0x4] %v1015_v62  ;;  %v981_v62 = vld [vmem:[#allocation2] sm:$0x7] }
  0x28   : > { %643 = vmatpush.bf16.msra.mxu0 %v3877_v28  ;;  %1007 = vst [vmem:[#allocation2 + $0x18] sm:$0x4] %v1006_v27  ;;  %v1008_v28 = vld [vmem:[#allocation2 + $0x1c] sm:$0x4] }
  0x29   : > { %672 = vmatpush.bf16.msra.mxu1 %v3885_v29 }
  0x2a   : > { %701 = vmatpush.bf16.msra.mxu2 %v3893_v30 }
  0x2b   : > { %730 = vmatpush.bf16.msra.mxu3 %v3901_v31  ;;  %644 = vmatmul.bf16.vlgmr.msra.gmra.mxu0 %v3124_v40  ;;  %v1009_v31 = vsel %vm4279_vm2, 0, %v1008_v28  ;;  %v3939_v40 = vld [vmem:[%s5038_s3 + $0xf0] sm:$0xff] }
  0x2c   : > { %673 = vmatmul.bf16.vlgmr.msra.gmra.mxu1 %v3128_v41  ;;  %2696 = vmatpush.bf16.msrb.mxu0 %v3916_v20  ;;  %1010 = vst [vmem:[#allocation2 + $0x1c] sm:$0x4] %v1009_v31 }
  0x2d   : > { %702 = vmatmul.bf16.vlgmr.msra.gmra.mxu2 %v3132_v42  ;;  %2710 = vmatpush.bf16.msrb.mxu1 %v3924_v21 }
  0x2e   : > { %731 = vmatmul.bf16.vlgmr.msra.gmra.mxu3 %v3136_v43  ;;  %2724 = vmatpush.bf16.msrb.mxu2 %v3932_v22 }
  0x2f   : > { %2738 = vmatpush.bf16.msrb.mxu3 %v3940_v23 }
  0x30   : > { %2697 = vmatpush.bf16.msrb.mxu0 %v3915_v37 }
  0x31   : > { %2711 = vmatpush.bf16.msrb.mxu1 %v3923_v38  ;;  %v3937_v38 = vld [vmem:[%s5038_s3 + $0xe0] sm:$0xff] }
  0x32   : > { %2725 = vmatpush.bf16.msrb.mxu2 %v3931_v39 }
  0x33   : > { %2739 = vmatpush.bf16.msrb.mxu3 %v3939_v40 }
  0x34   : > { %2698 = vmatpush.bf16.msrb.mxu0 %v3914_v44 }
  0x35   : > { %2712 = vmatpush.bf16.msrb.mxu1 %v3922_v45 }
  0x36   : > { %2726 = vmatpush.bf16.msrb.mxu2 %v3930_v46 }
  0x37   : > { %2740 = vmatpush.bf16.msrb.mxu3 %v3938_v50  ;;  %v3928_v50 = vld [vmem:[%s5038_s3 + $0x98] sm:$0xff] }
  0x3b   : > { %649 = vmatmul.bf16.gmra.mxu0 %v3140_v52  ;;  %2741 = vmatpush.bf16.msrb.mxu3 %v3937_v38 }
  0x3c   : > { %678 = vmatmul.bf16.gmra.mxu1 %v3144_v53  ;;  %v1011_v53 = vld [vmem:[#allocation2 + $0x20] sm:$0x4] }
  0x3d   : > { %707 = vmatmul.bf16.gmra.mxu2 %v3148_v54  ;;  %v1012_v56 = vsel %vm4279_vm2, 0, %v1011_v53  ;;  %v909_v53 = vld [vmem:[#allocation2 + $0xc] sm:$0x7] }
  0x3e   : > { %736 = vmatmul.bf16.gmra.mxu3 %v3152_v55  ;;  %1013 = vst [vmem:[#allocation2 + $0x20] sm:$0x4] %v1012_v56 }
  0x4b   : > { %654 = vmatmul.bf16.gmra.mxu0 %v3156_v0 }
  0x4c   : > { %683 = vmatmul.bf16.gmra.mxu1 %v3160_v1 }
  0x4d   : > { %712 = vmatmul.bf16.gmra.mxu2 %v3164_v2 }
  0x4e   : > { %741 = vmatmul.bf16.gmra.mxu3 %v3168_v3 }
  0x5b   : > { %659 = vmatmul.bf16.gmra.mxu0 %v3172_v12 }
  0x5c   : > { %688 = vmatmul.bf16.gmra.mxu1 %v3176_v13 }
  0x5d   : > { %717 = vmatmul.bf16.gmra.mxu2 %v3180_v14 }
  0x5e   : > { %746 = vmatmul.bf16.gmra.mxu3 %v3184_v15 }
  0xa8   : > { %v645_v17 = vpop.f32.mrf.mxu0 }
  0xa9   : > { %v674_v18 = vpop.f32.mrf.mxu1  ;;  %v646_v19 = vadd.f32 %v4263_v16, %v645_v17 }
  0xab   : > { %v675_v24 = vadd.f32 %v674_v18, %v646_v19 }
  0xb0   : > { %v703_v29 = vpop.f32.mrf.mxu2  ;;  %v647_v33 = vpop.f32.mrf.mxu0 }
  0xb1   : > { %v732_v30 = vpop.f32.mrf.mxu3  ;;  %v704_v32 = vadd.f32 %v703_v29, %v675_v24  ;;  %v676_v34 = vpop.f32.mrf.mxu1  ;;  %v648_v36 = vadd.f32 %v4263_v16, %v647_v33  ;;  %v903_v24 = vld [vmem:[#allocation2 + $0x4] sm:$0x7]  ;;  %v3913_v33 = vld [vmem:[%s5038_s3 + $0x20] sm:$0xff] }
  0xb2   : > { %2699 = vmatpush.bf16.msrb.mxu0 %v3913_v33 }
  0xb3   : > { %v733_v35 = vadd.f32 %v732_v30, %v704_v32  ;;  %v677_v43 = vadd.f32 %v676_v34, %v648_v36  ;;  %v3921_v34 = vld [vmem:[%s5038_s3 + $0x60] sm:$0xff]  ;;  %v906_v36 = vld [vmem:[#allocation2 + $0x8] sm:$0x7] }
  0xb4   : > { %2713 = vmatpush.bf16.msrb.mxu1 %v3921_v34 }
  0xb5   : > { %vm752_vm3 = vcmp.gt.f32.partialorder %v733_v35, 0.0  ;;  %v760_v41 = vmul.f32 0.2, %v733_v35 }
  0xb7   : > { %v768_v42 = vsel %vm752_vm3, %v733_v35, %v760_v41  ;;  %v3929_v35 = vld [vmem:[%s5038_s3 + $0xa0] sm:$0xff]  ;;  %vm1506_vm3 = vcmask 1043456  }
  0xb8   : > { %v776_v47 = vpack.c.bf16 %v768_v42, %v768_v42  ;;  %v705_v48 = vpop.f32.mrf.mxu2  ;;  %v650_v52 = vpop.f32.mrf.mxu0  ;;  %2727 = vmatpush.bf16.msrb.mxu2 %v3929_v35 }
  0xb9   : > { %v734_v49 = vpop.f32.mrf.mxu3  ;;  %v706_v51 = vadd.f32 %v705_v48, %v677_v43  ;;  %v651_v55 = vadd.f32 %v4263_v16, %v650_v52  ;;  %v679_v61 = vpop.f32.mrf.mxu1  ;;  %v3912_v48 = vld [vmem:[%s5038_s3 + $0x18] sm:$0xff] }
  0xba   : > { %v792_v54 = vrot.slane %v776_v47, 2  ;;  %2700 = vmatpush.bf16.msrb.mxu0 %v3912_v48 }
  0xbb   : > { %v735_v57 = vadd.f32 %v734_v49, %v706_v51  ;;  %v680_v1 = vadd.f32 %v679_v61, %v651_v55  ;;  %v3920_v49 = vld [vmem:[%s5038_s3 + $0x58] sm:$0xff] }
  0xbc   : > { %v803_v59 = vsel %vm800_vm4, %v776_v47, %v792_v54  ;;  %v805_v60 = vsel %vm804_vm5, %v776_v47, %v792_v54  ;;  %2714 = vmatpush.bf16.msrb.mxu1 %v3920_v49  ;;  %2728 = vmatpush.bf16.msrb.mxu2 %v3928_v50 }
  0xbd   : > { %v807_v63 = vrot.slane %v805_v60, 2  ;;  %858 = vst [vmem:[#allocation1] ss:$2 sm:$0xff] %v803_v59  ;;  %vm753_vm6 = vcmp.gt.f32.partialorder %v735_v57, 0.0  ;;  %v761_v0 = vmul.f32 0.2, %v735_v57 }
  0xbe   : > { %v3955_v59 = vld [vmem:[%s5038_s3 + $0x170] sm:$0xff] }
  0xbf   : > { %862 = vst [vmem:[#allocation1 + $0x10] ss:$2 sm:$0xff] %v807_v63  ;;  %v769_v2 = vsel %vm753_vm6, %v735_v57, %v761_v0  ;;  %v1000_v63 = vld [vmem:[#allocation2 + $0x14] sm:$0x7] }
  0xc0   : > { %v777_v3 = vpack.c.bf16 %v769_v2, %v769_v2  ;;  %v708_v4 = vpop.f32.mrf.mxu2  ;;  %v652_v7 = vpop.f32.mrf.mxu0 }
  0xc1   : > { %v709_v5 = vadd.f32 %v708_v4, %v680_v1  ;;  %v737_v6 = vpop.f32.mrf.mxu3  ;;  %v653_v13 = vadd.f32 %v4263_v16, %v652_v7  ;;  %v681_v22 = vpop.f32.mrf.mxu1  ;;  %v982_v4 = vsel %vm4357_vm14, 0, %v981_v62 }
  0xc2   : > { %v793_v8 = vrot.slane %v777_v3, 2  ;;  %983 = vst [vmem:[#allocation2] sm:$0x7] %v982_v4 }
  0xc3   : > { %v738_v9 = vadd.f32 %v737_v6, %v709_v5  ;;  %v682_v27 = vadd.f32 %v681_v22, %v653_v13  ;;  %v3936_v5 = vld [vmem:[%s5038_s3 + $0xd8] sm:$0xff] }
  0xc4   : > { %v859_v10 = vld.sshfl [vmem:[#allocation1] sm:$0xff pattern:$0x75643120]  ;;  %v810_v11 = vsel %vm800_vm4, %v777_v3, %v793_v8  ;;  %v811_v12 = vsel %vm804_vm5, %v777_v3, %v793_v8  ;;  %v912_v6 = vld [vmem:[#allocation2 + $0x10] sm:$0x7]  ;;  %v1001_v8 = vsel %vm4357_vm14, 0, %v1000_v63  ;;  %2742 = vmatpush.bf16.msrb.mxu3 %v3936_v5 }
  0xc5   : > { %v871_v14 = vshrl.u32 %v859_v10, 16  ;;  %v813_v15 = vrot.slane %v811_v12, 2  ;;  %865 = vst [vmem:[#allocation1 + $0x20] ss:$2 sm:$0xff] %v810_v11  ;;  %vm754_vm9 = vcmp.gt.f32.partialorder %v738_v9, 0.0  ;;  %v874_v20 = vshll.u32 %v859_v10, 16 }
  0xc6   : > { %v863_v17 = vld.sshfl [vmem:[#allocation1 + $0x10] sm:$0xff pattern:$0x75643120]  ;;  %v762_v18 = vmul.f32 0.2, %v738_v9  ;;  %v3918_v5 = vld [vmem:[%s5038_s3 + $0x48] sm:$0xff] }
  0xc7   : > { %v873_v19 = vrot.slane %v871_v14, 7  ;;  %v877_v21 = vshrl.u32 %v863_v17, 16  ;;  %869 = vst [vmem:[#allocation1 + $0x30] ss:$2 sm:$0xff] %v813_v15  ;;  %v880_v31 = vshll.u32 %v863_v17, 16 }
  0xc8   : > { %v770_v26 = vsel %vm754_vm9, %v738_v9, %v762_v18  ;;  %v710_v28 = vpop.f32.mrf.mxu2  ;;  %v655_v58 = vpop.f32.mrf.mxu0  ;;  %1002 = vst [vmem:[#allocation2 + $0x14] sm:$0x7] %v1001_v8 }
  0xc9   : > { %v876_v29 = vor.u32 %v874_v20, %v873_v19  ;;  %v879_v30 = vrot.slane %v877_v21, 7  ;;  %v778_v32 = vpack.c.bf16 %v770_v26, %v770_v26  ;;  %v711_v37 = vadd.f32 %v710_v28, %v682_v27  ;;  %v739_v42 = vpop.f32.mrf.mxu3  ;;  %v684_v13 = vpop.f32.mrf.mxu1  ;;  %v3911_v27 = vld [vmem:[%s5038_s3 + $0x10] sm:$0xff] }
  0xca   : > { %v656_v61 = vadd.f32 %v4263_v16, %v655_v58  ;;  %2701 = vmatpush.bf16.msrb.mxu0 %v3911_v27  ;;  %v3910_v58 = vld [vmem:[%s5038_s3 + $0x8] sm:$0xff] }
  0xcb   : > { %v882_v39 = vor.u32 %v880_v31, %v879_v30  ;;  %v904_v40 = vsel %vm4324_vm10, %v876_v29, %v903_v24  ;;  %v794_v41 = vrot.slane %v778_v32, 2  ;;  %v740_v44 = vadd.f32 %v739_v42, %v711_v37 }
  0xcc   : > { %905 = vst [vmem:[#allocation2 + $0x4] sm:$0x7] %v904_v40  ;;  %v866_v43 = vld.sshfl [vmem:[#allocation1 + $0x20] sm:$0xff pattern:$0x75643120]  ;;  %v685_v15 = vadd.f32 %v684_v13, %v656_v61  ;;  %v3927_v40 = vld [vmem:[%s5038_s3 + $0x90] sm:$0xff] }
  0xcd   : > { %v907_v45 = vsel %vm4324_vm10, %v882_v39, %v906_v36  ;;  %v883_v46 = vshrl.u32 %v866_v43, 16  ;;  %v816_v47 = vsel %vm800_vm4, %v778_v32, %v794_v41  ;;  %v886_v52 = vshll.u32 %v866_v43, 16  ;;  %v3919_v36 = vld [vmem:[%s5038_s3 + $0x50] sm:$0xff]  ;;  %2729 = vmatpush.bf16.msrb.mxu2 %v3927_v40 }
  0xce   : > { %908 = vst [vmem:[#allocation2 + $0x8] sm:$0x7] %v907_v45  ;;  %v870_v51 = vld.sshfl [vmem:[#allocation1 + $0x30] sm:$0xff pattern:$0x75643120]  ;;  %v817_v54 = vsel %vm804_vm5, %v778_v32, %v794_v41  ;;  %vm755_vm13 = vcmp.gt.f32.partialorder %v740_v44, 0.0  ;;  %2715 = vmatpush.bf16.msrb.mxu1 %v3919_v36  ;;  %2702 = vmatpush.bf16.msrb.mxu0 %v3910_v58 }
  0xcf   : > { %v885_v55 = vrot.slane %v883_v46, 7  ;;  %v889_v56 = vshrl.u32 %v870_v51, 16  ;;  %v819_v57 = vrot.slane %v817_v54, 2  ;;  %916 = vst [vmem:[#allocation2 + $0x18] sm:$0x3] %v816_v47  ;;  %v892_v2 = vshll.u32 %v870_v51, 16 }
  0xd0   : > { %v763_v60 = vmul.f32 0.2, %v740_v44  ;;  %v713_v20 = vpop.f32.mrf.mxu2  ;;  %v3935_v41 = vld [vmem:[%s5038_s3 + $0xd0] sm:$0xff]  ;;  %v657_v50 = vpop.f32.mrf.mxu0  ;;  %v3956_v36 = vld [vmem:[%s5038_s3 + $0x178] sm:$0xff] }
  0xd1   : > { %v888_v0 = vor.u32 %v886_v52, %v885_v55  ;;  %v891_v1 = vrot.slane %v889_v56, 7  ;;  %917 = vst [vmem:[#allocation2 + $0x1c] sm:$0x3] %v819_v57  ;;  %v714_v26 = vadd.f32 %v713_v20, %v685_v15  ;;  %v742_v29 = vpop.f32.mrf.mxu3  ;;  %2743 = vmatpush.bf16.msrb.mxu3 %v3935_v41  ;;  %v658_v62 = vadd.f32 %v4263_v16, %v657_v50  ;;  %v686_v4 = vpop.f32.mrf.mxu1  ;;  %v3917_v20 = vld [vmem:[%s5038_s3 + $0x40] sm:$0xff]  ;;  %v1061_v41 = vld [vmem:[#allocation2 + $0x14] sm:$0x7] }
  0xd2   : > { %v771_v7 = vsel %vm755_vm13, %v740_v44, %v763_v60  ;;  %2716 = vmatpush.bf16.msrb.mxu1 %v3918_v5  ;;  %v1159_v5 = vunpack.c.l.b16 %v1061_v41 }
  0xd3   : > { %v894_v9 = vor.u32 %v892_v2, %v891_v1  ;;  %v910_v10 = vsel %vm4324_vm10, %v888_v0, %v909_v53  ;;  %v987_v11 = vld [vmem:[#allocation2 + $0x4] sm:$0x1]  ;;  %v779_v12 = vpack.c.bf16 %v771_v7, %v771_v7  ;;  %v743_v30 = vadd.f32 %v742_v29, %v714_v26  ;;  %v1057_v53 = vld [vmem:[#allocation2] sm:$0x7]  ;;  %v1034_v26 = vld [vmem:[#allocation2 + $0x4c] sm:$0x7] }
  0xd4   : > { %911 = vst [vmem:[#allocation2 + $0xc] sm:$0x7] %v910_v10  ;;  %v988_v14 = vsel %vm4364_vm15, 0, %v987_v11  ;;  %v1119_v2 = vunpack.c.l.b16 %v1057_v53  ;;  %v3934_v7 = vld [vmem:[%s5038_s3 + $0xc8] sm:$0xff]  ;;  %v3925_v29 = vld [vmem:[%s5038_s3 + $0x80] sm:$0xff] }
  0xd5   : > { %v913_v17 = vsel %vm4324_vm10, %v894_v9, %v912_v6  ;;  %989 = vst [vmem:[#allocation2 + $0x4] sm:$0x1] %v988_v14  ;;  %v990_v18 = vld [vmem:[#allocation2 + $0x8] sm:$0x1]  ;;  %v795_v19 = vrot.slane %v779_v12, 2  ;;  %vm756_vm0 = vcmp.gt.f32.partialorder %v743_v30, 0.0  ;;  %2744 = vmatpush.bf16.msrb.mxu3 %v3934_v7 }
  0xd6   : > { %914 = vst [vmem:[#allocation2 + $0x10] sm:$0x7] %v913_v17  ;;  %v991_v21 = vsel %vm4364_vm15, 0, %v990_v18  ;;  %v1062_v32 = vld [vmem:[#allocation2 + $0x18] sm:$0x7]  ;;  %v3926_v6 = vld [vmem:[%s5038_s3 + $0x88] sm:$0xff]  ;;  %2717 = vmatpush.bf16.msrb.mxu1 %v3917_v20 }
  0xd7   : > { %992 = vst [vmem:[#allocation2 + $0x8] sm:$0x1] %v991_v21  ;;  %v822_v22 = vsel %vm800_vm4, %v779_v12, %v795_v19  ;;  %v823_v24 = vsel %vm804_vm5, %v779_v12, %v795_v19  ;;  %v764_v35 = vmul.f32 0.2, %v743_v30  ;;  %v1160_v38 = vunpack.c.l.b16 %v1062_v32  ;;  %v1093_v42 = vld [vmem:[#allocation2 + $0x18] sm:$0x7]  ;;  %2730 = vmatpush.bf16.msrb.mxu2 %v3926_v6 }
  0xd8   : > { %918 = vst [vmem:[#allocation2 + $0x20] sm:$0x3] %v822_v22  ;;  %v825_v28 = vrot.slane %v823_v24, 2  ;;  %v1063_v37 = vld [vmem:[#allocation2 + $0x1c] sm:$0x7]  ;;  %v1319_v48 = vunpack.c.l.b16 %v1093_v42  ;;  %v715_v13 = vpop.f32.mrf.mxu2  ;;  %v3948_v21 = vld [vmem:[%s5038_s3 + $0x138] sm:$0xff] }
  0xd9   : > { %v772_v43 = vsel %vm756_vm0, %v743_v30, %v764_v35  ;;  %v1161_v44 = vunpack.c.l.b16 %v1063_v37  ;;  %v1094_v45 = vld [vmem:[#allocation2 + $0x1c] sm:$0x7]  ;;  %v4402_v46 = vpack.c.b16 %v1160_v38, %v1160_v38  ;;  %v4404_v47 = vld [vmem:[#allocation2 + $0x18] sm:$0x3]  ;;  %v4464_v35 = vpack.c.b16 %v1119_v2, %v1119_v2  ;;  %v3964_v37 = vld [vmem:[%s5038_s3 + $0x1b8] sm:$0xff]  ;;  %v4498_v7 = vpop.f32.mrf.mxu1 }
  0xda   : > { %919 = vst [vmem:[#allocation2 + $0x24] sm:$0x3] %v825_v28  ;;  %v780_v49 = vpack.c.bf16 %v772_v43, %v772_v43  ;;  %v4406_v51 = vld [vmem:[#allocation2 + $0x1c] sm:$0x3]  ;;  %v4408_v52 = vld [vmem:[#allocation2 + $0x18] sm:$0x3]  ;;  %v1320_v57 = vunpack.c.l.b16 %v1094_v45  ;;  %v4421_v63 = vpack.c.b16 %v1319_v48, %v1319_v48  ;;  %v687_v28 = vadd.f32 %v686_v4, %v658_v62  ;;  %v744_v43 = vpop.f32.mrf.mxu3  ;;  %2766 = vmatpush.bf16.msra.mxu1 %v3956_v36 }
  0xdb   : > { %v993_v31 = vld [vmem:[#allocation2 + $0xc] sm:$0x1]  ;;  %v4410_v54 = vld [vmem:[#allocation2 + $0x1c] sm:$0x3]  ;;  %v4412_v56 = vpack.c.b16 %v1161_v44, %v1161_v44  ;;  %v1177_v60 = vshll.u32 %v4402_v46, 16  ;;  %v1457_v0 = vrot.slane %v4408_v52, 6  ;;  %2731 = vmatpush.bf16.msrb.mxu2 %v3925_v29 }
  0xdc   : > { %v994_v34 = vsel %vm4364_vm15, 0, %v993_v31  ;;  %v1089_v55 = vld [vmem:[#allocation2 + $0x4] sm:$0x7]  ;;  %v796_v1 = vrot.slane %v780_v49, 2  ;;  %v1463_v10 = vrot.slane %v4404_v47, 6  ;;  %v1469_v11 = vrot.slane %v4410_v54, 6 }
  0xdd   : > { %v996_v33 = vld [vmem:[#allocation2 + $0x10] sm:$0x1]  ;;  %995 = vst [vmem:[#allocation2 + $0xc] sm:$0x1] %v994_v34  ;;  %v1279_v9 = vunpack.c.l.b16 %v1089_v55  ;;  %v1475_v12 = vrot.slane %v4406_v51, 6  ;;  %v3909_v14 = vld [vmem:[%s5038_s3] sm:$0xff]  ;;  %v4443_v18 = vpack.c.b16 %v1320_v57, %v1320_v57  ;;  %v716_v42 = vadd.f32 %v715_v13, %v687_v28  ;;  %v4487_v57 = vpop.f32.mrf.mxu0 }
  0xde   : > { %v997_v39 = vsel %vm4364_vm15, 0, %v996_v33  ;;  %v4418_v61 = vld [vmem:[#allocation2 + $0x8] sm:$0x7]  ;;  %v1175_v15 = vshrl.u32 %v4402_v46, 16  ;;  %v1182_v17 = vshrl.u32 %v4412_v56, 16  ;;  %v1179_v22 = vrot.slane %v1177_v60, 1  ;;  %2703 = vmatpush.bf16.msrb.mxu0 %v3909_v14  ;;  %2767 = vmatpush.bf16.msra.mxu1 %v3955_v59 }
  0xdf   : > { %998 = vst [vmem:[#allocation2 + $0x10] sm:$0x1] %v997_v39  ;;  %v4433_v8 = vld [vmem:[#allocation2 + $0x8] sm:$0x7]  ;;  %v1018_v19 = vld [vmem:[#allocation2 + $0x38] sm:$0x7]  ;;  %v1121_v27 = vunpack.c.l.b16 %v4418_v61  ;;  %v828_v34 = vsel %vm800_vm4, %v780_v49, %v796_v1  ;;  %v4473_v39 = vpack.c.b16 %v1279_v9, %v1279_v9  ;;  %v829_v40 = vsel %vm804_vm5, %v780_v49, %v796_v1  ;;  %2780 = vmatpush.bf16.msra.mxu2 %v3964_v37 }
  0xe0   : > { %v1184_v24 = vshll.u32 %v4412_v56, 16  ;;  %v3933_v30 = vld [vmem:[%s5038_s3 + $0xc0] sm:$0xff]  ;;  %v1328_v31 = vshrl.u32 %v4421_v63, 16  ;;  %v1330_v32 = vshll.u32 %v4421_v63, 16  ;;  %v4461_v33 = vld [vmem:[#allocation2 + $0x20] sm:$0x7]  ;;  %v1280_v38 = vunpack.c.l.b16 %v4433_v8 }
  0xe1   : > { %920 = vst [vmem:[#allocation1] ss:$2 sm:$0xff] %v828_v34  ;;  %v3972_v44 = vld [vmem:[%s5038_s3 + $0x1f8] sm:$0xff]  ;;  %v3947_v45 = vld [vmem:[%s5038_s3 + $0x130] sm:$0xff]  ;;  %v1335_v46 = vshrl.u32 %v4443_v18, 16  ;;  %v831_v48 = vrot.slane %v829_v40, 2  ;;  %v4489_v58 = vor.u32 %v1179_v22, %v1175_v15  ;;  %v1162_v61 = vunpack.c.l.b16 %v4461_v33  ;;  %2745 = vmatpush.bf16.msrb.mxu3 %v3933_v30  ;;  %v4515_v30 = vpop.f32.mrf.mxu2 }
  0xe2   : > { %2752 = vmatpush.bf16.msra.mxu0 %v3948_v21  ;;  %v1019_v50 = vsel %vm4357_vm14, 0, %v1018_v19  ;;  %v1035_v49 = vsel %vm4357_vm14, 0, %v1034_v26  ;;  %v1051_v53 = vld [vmem:[#allocation2 + $0x8] sm:$0x3]  ;;  %v1053_v55 = vld [vmem:[#allocation2 + $0x14] sm:$0x3]  ;;  %v1125_v1 = vpack.c.b16 %v1121_v27, %v1121_v27  ;;  %v4503_v9 = vpack.c.b16 %v1280_v38, %v1280_v38 }
  0xe3   : > { %v1337_v60 = vshll.u32 %v4443_v18, 16  ;;  %1020 = vst [vmem:[#allocation2 + $0x38] sm:$0x7] %v1019_v50  ;;  %v1049_v62 = vld [vmem:[#allocation2] sm:$0x3]  ;;  %v1128_v2 = vshrl.u32 %v4464_v35, 16  ;;  %v1163_v22 = vpack.c.b16 %v1159_v5, %v1159_v5  ;;  %v1559_v28 = vsel %vm800_vm4, %v1051_v53, %v1475_v12 }
  0xe4   : > { %924 = vst [vmem:[#allocation1 + $0x10] ss:$2 sm:$0xff] %v831_v48  ;;  %v1130_v4 = vshll.u32 %v4464_v35, 16  ;;  %v1186_v6 = vrot.slane %v1184_v24, 1  ;;  %v3963_v8 = vld [vmem:[%s5038_s3 + $0x1b0] sm:$0xff]  ;;  %v1288_v13 = vshrl.u32 %v4473_v39, 16  ;;  %v745_v29 = vadd.f32 %v744_v43, %v716_v42  ;;  %v747_v42 = vpop.f32.mrf.mxu3 }
  0xe5   : > { %1036 = vst [vmem:[#allocation2 + $0x4c] sm:$0x7] %v1035_v49  ;;  %v1144_v14 = vshll.u32 %v1125_v1, 16  ;;  %v1451_v15 = vrot.slane %v1053_v55, 6  ;;  %2794 = vmatpush.bf16.msra.mxu3 %v3972_v44  ;;  %v3971_v19 = vld [vmem:[%s5038_s3 + $0x1f0] sm:$0xff]  ;;  %v1290_v20 = vshll.u32 %v4473_v39, 16  ;;  %v4524_v56 = vpack.c.b16 %v1162_v61, %v1162_v61  ;;  %2781 = vmatpush.bf16.msra.mxu2 %v3963_v8 }
  0xe6   : > { %2753 = vmatpush.bf16.msra.mxu0 %v3947_v45  ;;  %v1132_v21 = vrot.slane %v1130_v4, 1  ;;  %v1187_v24 = vor.u32 %v1186_v6, %v1182_v17  ;;  %v1142_v26 = vshrl.u32 %v1125_v1, 16  ;;  %v1037_v33 = vld [vmem:[#allocation2 + $0x3c] sm:$0x4]  ;;  %v3946_v34 = vld [vmem:[%s5038_s3 + $0x128] sm:$0xff]  ;;  %v4522_v35 = vrot.slane %v1330_v32, 1 }
  0xe7   : > { %v1146_v27 = vrot.slane %v1144_v14, 1  ;;  %v4529_v51 = vsel %vm800_vm4, %v1049_v62, %v1451_v15  ;;  %v3954_v12 = vld [vmem:[%s5038_s3 + $0x168] sm:$0xff]  ;;  %v1168_v41 = vshrl.u32 %v1163_v22, 16  ;;  %v962_v45 = vld [vmem:[#allocation2 + $0x28] sm:$0x7]  ;;  %v1170_v48 = vshll.u32 %v1163_v22, 16  ;;  %v662_v15 = vpop.f32.mrf.mxu0 }
  0xe8   : > { %v921_v17 = vld.sshfl [vmem:[#allocation1] sm:$0xff pattern:$0x75643120]  ;;  %v4526_v36 = vor.u32 %v1132_v21, %v1128_v2  ;;  %v3962_v37 = vld [vmem:[%s5038_s3 + $0x1a8] sm:$0xff]  ;;  %v1477_v49 = vrot.slane %v1187_v24, 2  ;;  %vm757_vm6 = vcmp.gt.f32.partialorder %v745_v29, 0.0  ;;  %v661_v59 = vadd.f32 %v4263_v16, %v4487_v57  ;;  %2768 = vmatpush.bf16.msra.mxu1 %v3954_v12 }
  0xe9   : > { %v933_v32 = vshrl.u32 %v921_v17, 16  ;;  %v936_v38 = vshll.u32 %v921_v17, 16  ;;  %v1147_v40 = vor.u32 %v1146_v27, %v1142_v26  ;;  %v1040_v43 = vld [vmem:[#allocation2 + $0x40] sm:$0x4]  ;;  %2795 = vmatpush.bf16.msra.mxu3 %v3971_v19  ;;  %v3945_v53 = vld [vmem:[%s5038_s3 + $0x120] sm:$0xff]  ;;  %v1038_v2 = vsel %vm4279_vm2, 0, %v1037_v33  ;;  %2782 = vmatpush.bf16.msra.mxu2 %v3962_v37 }
  0xea   : > { %2754 = vmatpush.bf16.msra.mxu0 %v3946_v34  ;;  %v3970_v44 = vld [vmem:[%s5038_s3 + $0x1e8] sm:$0xff]  ;;  %v1452_v50 = vrot.slane %v4526_v36, 4  ;;  %v3953_v55 = vld [vmem:[%s5038_s3 + $0x160] sm:$0xff]  ;;  %v1172_v8 = vrot.slane %v1170_v48, 1  ;;  %v765_v14 = vmul.f32 0.2, %v745_v29  ;;  %v690_v57 = vadd.f32 %v4498_v7, %v661_v59 }
  0xeb   : > { %v925_v61 = vld.sshfl [vmem:[#allocation1 + $0x10] sm:$0xff pattern:$0x75643120]  ;;  %v935_v62 = vrot.slane %v933_v32, 7  ;;  %v1476_v1 = vrot.slane %v1147_v40, 4  ;;  %v3961_v19 = vld [vmem:[%s5038_s3 + $0x1a0] sm:$0xff]  ;;  %v691_v32 = vpop.f32.mrf.mxu1 }
  0xec   : > { %v1043_v4 = vld [vmem:[#allocation2 + $0x44] sm:$0x4]  ;;  %v939_v5 = vshrl.u32 %v925_v61, 16  ;;  %v942_v6 = vshll.u32 %v925_v61, 16  ;;  %v965_v22 = vld [vmem:[#allocation2 + $0x2c] sm:$0x7]  ;;  %v1173_v17 = vor.u32 %v1172_v8, %v1168_v41  ;;  %v773_v37 = vsel %vm757_vm6, %v745_v29, %v765_v14  ;;  %2769 = vmatpush.bf16.msra.mxu1 %v3953_v55  ;;  %v749_v36 = vpop.f32.mrf.mxu3 }
  0xed   : > { %v938_v21 = vor.u32 %v936_v38, %v935_v62  ;;  %v1562_v24 = vsel %vm1502_vm1, %v1476_v1, %v1477_v49  ;;  %1039 = vst [vmem:[#allocation2 + $0x3c] sm:$0x4] %v1038_v2  ;;  %v1041_v26 = vsel %vm4279_vm2, 0, %v1040_v43  ;;  %v1046_v27 = vld [vmem:[#allocation2 + $0x48] sm:$0x4]  ;;  %2796 = vmatpush.bf16.msra.mxu3 %v3970_v44  ;;  %v3969_v33 = vld [vmem:[%s5038_s3 + $0x1e0] sm:$0xff]  ;;  %v781_v41 = vpack.c.bf16 %v773_v37, %v773_v37  ;;  %v720_v1 = vpop.f32.mrf.mxu2 }
  0xee   : > { %v941_v34 = vrot.slane %v939_v5, 7  ;;  %v1563_v12 = vsel %vm1506_vm3, %v1559_v28, %v1562_v24  ;;  %1042 = vst [vmem:[#allocation2 + $0x40] sm:$0x4] %v1041_v26  ;;  %2755 = vmatpush.bf16.msra.mxu0 %v3945_v53  ;;  %v3944_v7 = vld [vmem:[%s5038_s3 + $0x118] sm:$0xff]  ;;  %v719_v28 = vadd.f32 %v4515_v30, %v690_v57  ;;  %v663_v29 = vadd.f32 %v4263_v16, %v662_v15  ;;  %v1058_v43 = vld [vmem:[#allocation2 + $0x4] sm:$0x7] }
  0xef   : > { %v3952_v38 = vld [vmem:[%s5038_s3 + $0x158] sm:$0xff]  ;;  %v963_v40 = vsel %vm4324_vm10, %v938_v21, %v962_v45  ;;  %1877 = vst [vmem:[#allocation1 + $0x2] ss:$4 sm:$0xff] %v1563_v12  ;;  %v1060_v44 = vld [vmem:[#allocation2 + $0xc] sm:$0x7]  ;;  %v1453_v49 = vrot.slane %v1173_v17, 2  ;;  %2783 = vmatpush.bf16.msra.mxu2 %v3961_v19  ;;  %v1120_v2 = vunpack.c.l.b16 %v1058_v43 }
  0xf0   : > { %v944_v48 = vor.u32 %v942_v6, %v941_v34  ;;  %964 = vst [vmem:[#allocation2 + $0x28] sm:$0x7] %v963_v40  ;;  %v1044_v53 = vsel %vm4279_vm2, 0, %v1043_v4  ;;  %v1047_v61 = vsel %vm4279_vm2, 0, %v1046_v27  ;;  %v3960_v45 = vld [vmem:[%s5038_s3 + $0x198] sm:$0xff]  ;;  %v797_v30 = vrot.slane %v781_v41, 2  ;;  %2770 = vmatpush.bf16.msra.mxu1 %v3952_v38 }
  0xf1   : > { %v748_v62 = vadd.f32 %v747_v42, %v719_v28  ;;  %v692_v16 = vadd.f32 %v691_v32, %v663_v29  ;;  %1045 = vst [vmem:[#allocation2 + $0x44] sm:$0x4] %v1044_v53  ;;  %2797 = vmatpush.bf16.msra.mxu3 %v3969_v33  ;;  %v3968_v59 = vld [vmem:[%s5038_s3 + $0x1d8] sm:$0xff]  ;;  %v1465_v25 = vrot.slane %v4489_v58, 2  ;;  %v4584_v4 = vld [vmem:[#allocation2 + $0x20] sm:$0x7]  ;;  %v1505_v42 = vsel %vm1502_vm1, %v1452_v50, %v1453_v49 }
  0xf2   : > { %v966_v55 = vsel %vm4324_vm10, %v944_v48, %v965_v22  ;;  %1048 = vst [vmem:[#allocation2 + $0x48] sm:$0x4] %v1047_v61  ;;  %2756 = vmatpush.bf16.msra.mxu0 %v3944_v7  ;;  %v3943_v5 = vld [vmem:[%s5038_s3 + $0x110] sm:$0xff]  ;;  %v1122_v6 = vunpack.c.l.b16 %v1060_v44  ;;  %v1096_v8 = vld [vmem:[#allocation2 + $0x24] sm:$0x7]  ;;  %v1507_v14 = vsel %vm1506_vm3, %v4529_v51, %v1505_v42  ;;  %v834_v15 = vsel %vm800_vm4, %v781_v41, %v797_v30 }
  0xf3   : > { %967 = vst [vmem:[#allocation2 + $0x2c] sm:$0x7] %v966_v55  ;;  %v835_v19 = vsel %vm804_vm5, %v781_v41, %v797_v30  ;;  %vm758_vm2 = vcmp.gt.f32.partialorder %v748_v62, 0.0  ;;  %v3951_v50 = vld [vmem:[%s5038_s3 + $0x150] sm:$0xff]  ;;  %v766_v22 = vmul.f32 0.2, %v748_v62  ;;  %v721_v24 = vadd.f32 %v720_v1, %v692_v16  ;;  %2784 = vmatpush.bf16.msra.mxu2 %v3960_v45 }
  0xf4   : > { %1873 = vst [vmem:[#allocation1] ss:$4 sm:$0xff] %v1507_v14  ;;  %v837_v21 = vrot.slane %v835_v19, 2  ;;  %v3959_v51 = vld [vmem:[%s5038_s3 + $0x190] sm:$0xff]  ;;  %v1124_v57 = vpack.c.b16 %v1120_v2, %v1120_v2  ;;  %v1292_v26 = vrot.slane %v1290_v20, 1  ;;  %v1297_v27 = vshll.u32 %v4503_v9, 16  ;;  %2771 = vmatpush.bf16.msra.mxu1 %v3951_v50 }
  0xf5   : > { %v1191_v33 = vshll.u32 %v4524_v56, 16  ;;  %927 = vst [vmem:[#allocation1 + $0x20] ss:$2 sm:$0xff] %v834_v15  ;;  %2798 = vmatpush.bf16.msra.mxu3 %v3968_v59  ;;  %v3967_v34 = vld [vmem:[%s5038_s3 + $0x1d0] sm:$0xff]  ;;  %v774_v17 = vsel %vm758_vm2, %v748_v62, %v766_v22  ;;  %v750_v12 = vadd.f32 %v749_v36, %v721_v24  ;;  %v4612_v37 = vpack.c.b16 %v1122_v6, %v1122_v6  ;;  %v1092_v61 = vld [vmem:[#allocation2 + $0x10] sm:$0x7] }
  0xf6   : > { %931 = vst [vmem:[#allocation1 + $0x30] ss:$2 sm:$0xff] %v837_v21  ;;  %2757 = vmatpush.bf16.msra.mxu0 %v3943_v5  ;;  %v1137_v32 = vshll.u32 %v1124_v57, 16  ;;  %v1321_v20 = vunpack.c.l.b16 %v4584_v4  ;;  %v1322_v7 = vunpack.c.l.b16 %v1096_v8  ;;  %v782_v40 = vpack.c.bf16 %v774_v17, %v774_v17  ;;  %v1091_v48 = vld [vmem:[#allocation2 + $0xc] sm:$0x7] }
  0xf7   : > { %v1021_v38 = vld [vmem:[#allocation2 + $0x28] sm:$0x1]  ;;  %v1135_v41 = vshrl.u32 %v1124_v57, 16  ;;  %vm759_vm7 = vcmp.gt.f32.partialorder %v750_v12, 0.0  ;;  %v767_v29 = vmul.f32 0.2, %v750_v12  ;;  %2785 = vmatpush.bf16.msra.mxu2 %v3959_v51  ;;  %v4619_v44 = vor.u32 %v1292_v26, %v1288_v13 }
  0xf8   : > { %v1022_v28 = vsel %vm4364_vm15, 0, %v1021_v38  ;;  %v1139_v43 = vrot.slane %v1137_v32, 1  ;;  %v1189_v49 = vshrl.u32 %v4524_v56, 16  ;;  %v798_v53 = vrot.slane %v782_v40, 2  ;;  %v1050_v4 = vld [vmem:[#allocation2 + $0x4] sm:$0x3] }
  0xf9   : > { %1023 = vst [vmem:[#allocation2 + $0x28] sm:$0x1] %v1022_v28  ;;  %2799 = vmatpush.bf16.msra.mxu3 %v3967_v34  ;;  %v1193_v45 = vrot.slane %v1191_v33, 1  ;;  %v775_v62 = vsel %vm759_vm7, %v750_v12, %v767_v29  ;;  %v1151_v1 = vshll.u32 %v4612_v37, 16  ;;  %v1281_v55 = vunpack.c.l.b16 %v1091_v48  ;;  %v968_v24 = vld [vmem:[#allocation2 + $0x30] sm:$0x7] }
  0xfa   : > { %v1024_v30 = vld [vmem:[#allocation2 + $0x2c] sm:$0x1]  ;;  %v1140_v16 = vor.u32 %v1139_v43, %v1135_v41  ;;  %v840_v59 = vsel %vm800_vm4, %v782_v40, %v798_v53  ;;  %v841_v2 = vsel %vm804_vm5, %v782_v40, %v798_v53  ;;  %v783_v13 = vpack.c.bf16 %v775_v62, %v775_v62  ;;  %v3942_v12 = vld [vmem:[%s5038_s3 + $0x108] sm:$0xff]  ;;  %v971_v28 = vld [vmem:[#allocation2 + $0x34] sm:$0x7] }
  0xfb   : > { %v1025_v39 = vsel %vm4364_vm15, 0, %v1024_v30  ;;  %v4627_v42 = vpack.c.b16 %v1321_v20, %v1321_v20  ;;  %v4629_v5 = vpack.c.b16 %v1322_v7, %v1322_v7  ;;  %v843_v8 = vrot.slane %v841_v2, 2  ;;  %975 = vst [vmem:[#allocation2 + $0x3c] sm:$0x3] %v840_v59  ;;  %v3958_v32 = vld [vmem:[%s5038_s3 + $0x188] sm:$0xff]  ;;  %2758 = vmatpush.bf16.msra.mxu0 %v3942_v12  ;;  %v3957_v56 = vld [vmem:[%s5038_s3 + $0x180] sm:$0xff] }
  0xfc   : > { %v928_v6 = vld.sshfl [vmem:[#allocation1 + $0x20] sm:$0xff pattern:$0x75643120]  ;;  %v1282_v14 = vunpack.c.l.b16 %v1092_v61  ;;  %v799_v36 = vrot.slane %v783_v13, 2  ;;  %v1149_v50 = vshrl.u32 %v4612_v37, 16  ;;  %v1153_v51 = vrot.slane %v1151_v1, 1  ;;  %2786 = vmatpush.bf16.msra.mxu2 %v3958_v32 }
  0xfd   : > { %v932_v15 = vld.sshfl [vmem:[#allocation1 + $0x30] sm:$0xff pattern:$0x75643120]  ;;  %v945_v19 = vshrl.u32 %v928_v6, 16  ;;  %v948_v21 = vshll.u32 %v928_v6, 16  ;;  %v1464_v57 = vrot.slane %v1140_v16, 4  ;;  %v1531_v17 = vsel %vm800_vm4, %v1050_v4, %v1463_v10 }
  0xfe   : > { %v951_v22 = vshrl.u32 %v932_v15, 16  ;;  %976 = vst [vmem:[#allocation2 + $0x40] sm:$0x3] %v843_v8  ;;  %v846_v33 = vsel %vm800_vm4, %v783_v13, %v799_v36  ;;  %v847_v34 = vsel %vm804_vm5, %v783_v13, %v799_v36  ;;  %v3950_v37 = vld [vmem:[%s5038_s3 + $0x148] sm:$0xff]  ;;  %v954_v7 = vshll.u32 %v932_v15, 16 }
  0xff   : > { %v947_v26 = vrot.slane %v945_v19, 7  ;;  %1026 = vst [vmem:[#allocation2 + $0x2c] sm:$0x1] %v1025_v39  ;;  %v849_v40 = vrot.slane %v847_v34, 2  ;;  %v1534_v47 = vsel %vm1502_vm1, %v1464_v57, %v1465_v25  ;;  %v4649_v10 = vpack.c.b16 %v1281_v55, %v1281_v55  ;;  %v3966_v48 = vld [vmem:[%s5038_s3 + $0x1c8] sm:$0xff]  ;;  %2772 = vmatpush.bf16.msra.mxu1 %v3950_v37  ;;  %v3949_v55 = vld [vmem:[%s5038_s3 + $0x140] sm:$0xff] }
 0x100   : > { %v953_v20 = vrot.slane %v951_v22, 7  ;;  %v1073_v38 = vld [vmem:[#allocation2 + $0x28] sm:$0x7]  ;;  %977 = vst [vmem:[#allocation2 + $0x44] sm:$0x3] %v846_v33  ;;  %v1535_v43 = vsel %vm1506_vm3, %v1531_v17, %v1534_v47  ;;  %v4657_v61 = vpack.c.b16 %v1282_v14, %v1282_v14  ;;  %v1154_v25 = vor.u32 %v1153_v51, %v1149_v50  ;;  %2800 = vmatpush.bf16.msra.mxu3 %v3966_v48 }
 0x101   : > { %v950_v41 = vor.u32 %v948_v21, %v947_v26  ;;  %v1199_v29 = vunpack.c.l.b16 %v1073_v38  ;;  %v4655_v53 = vld [vmem:[#allocation2 + $0x20] sm:$0x3]  ;;  %978 = vst [vmem:[#allocation2 + $0x48] sm:$0x3] %v849_v40  ;;  %v1339_v30 = vrot.slane %v1337_v60, 1  ;;  %v1344_v62 = vshll.u32 %v4627_v42, 16  ;;  %2787 = vmatpush.bf16.msra.mxu2 %v3957_v56 }
 0x102   : > { %v956_v58 = vor.u32 %v954_v7, %v953_v20  ;;  %v1077_v1 = vld [vmem:[#allocation2 + $0x3c] sm:$0x7]  ;;  %1875 = vst [vmem:[#allocation1 + $0x1] ss:$4 sm:$0xff] %v1535_v43  ;;  %v1194_v2 = vor.u32 %v1193_v45, %v1189_v49  ;;  %v1351_v39 = vshll.u32 %v4629_v5, 16  ;;  %v1295_v49 = vshrl.u32 %v4503_v9, 16 }
 0x103   : > { %v969_v16 = vsel %vm4324_vm10, %v950_v41, %v968_v24  ;;  %v1203_v59 = vpack.c.b16 %v1199_v29, %v1199_v29  ;;  %v1239_v4 = vunpack.c.l.b16 %v1077_v1  ;;  %v3941_v60 = vld [vmem:[%s5038_s3 + $0x100] sm:$0xff]  ;;  %v1299_v45 = vrot.slane %v1297_v27, 1  ;;  %2773 = vmatpush.bf16.msra.mxu1 %v3949_v55  ;;  %v1081_v22 = vld [vmem:[#allocation2 + $0x4] sm:$0x3]  ;;  %v1052_v12 = vld [vmem:[#allocation2 + $0xc] sm:$0x3] }
 0x104   : > { %970 = vst [vmem:[#allocation2 + $0x30] sm:$0x7] %v969_v16  ;;  %v972_v13 = vsel %vm4324_vm10, %v956_v58, %v971_v28  ;;  %v1458_v23 = vrot.slane %v4619_v44, 4  ;;  %v1487_v6 = vrot.slane %v4655_v53, 6  ;;  %v1304_v8 = vshll.u32 %v4649_v10, 16  ;;  %2759 = vmatpush.bf16.msra.mxu0 %v3941_v60  ;;  %v3965_v27 = vld [vmem:[%s5038_s3 + $0x1c0] sm:$0xff] }
 0x105   : > { %973 = vst [vmem:[#allocation2 + $0x34] sm:$0x7] %v972_v13  ;;  %v1311_v14 = vshll.u32 %v4657_v61, 16  ;;  %v1243_v15 = vpack.c.b16 %v1239_v4, %v1239_v4  ;;  %v1488_v19 = vrot.slane %v1154_v25, 4  ;;  %v1302_v36 = vshrl.u32 %v4649_v10, 16  ;;  %2801 = vmatpush.bf16.msra.mxu3 %v3965_v27  ;;  %v3980_v44 = vld [vmem:[%s5038_s3 + $0x238] sm:$0xff] }
 0x106   : > { %v1342_v50 = vshrl.u32 %v4627_v42, 16  ;;  %v1346_v21 = vrot.slane %v1344_v62, 1  ;;  %v1210_v9 = vshll.u32 %v1203_v59, 16  ;;  %v1353_v24 = vrot.slane %v1351_v39, 1  ;;  %v1069_v47 = vld [vmem:[#allocation2 + $0x3c] sm:$0x3] }
 0x107   : > { %v1489_v51 = vrot.slane %v1194_v2, 2  ;;  %v1248_v57 = vshrl.u32 %v1243_v15, 16  ;;  %v1250_v26 = vshll.u32 %v1243_v15, 16  ;;  %v1208_v33 = vshrl.u32 %v1203_v59, 16  ;;  %v1079_v17 = vld [vmem:[#allocation2 + $0x44] sm:$0x7] }
 0x108   : > { %v1212_v34 = vrot.slane %v1210_v9, 1  ;;  %v1306_v37 = vrot.slane %v1304_v8, 1  ;;  %v1313_v32 = vrot.slane %v1311_v14, 1  ;;  %v1333_v7 = vor.u32 %v4522_v35, %v1328_v31  ;;  %v1078_v10 = vld [vmem:[#allocation2 + $0x40] sm:$0x7] }
 0x109   : > { %v1252_v42 = vrot.slane %v1250_v26, 1  ;;  %v1590_v20 = vsel %vm1502_vm1, %v1488_v19, %v1489_v51  ;;  %v1340_v38 = vor.u32 %v1339_v30, %v1335_v46  ;;  %v4699_v40 = vsel %vm800_vm4, %v1081_v22, %v1457_v0  ;;  %v1107_v43 = vld [vmem:[#allocation2 + $0x2c] sm:$0x7]  ;;  %v1111_v48 = vld [vmem:[#allocation2 + $0x40] sm:$0x7] }
 0x10a   : > { %v1213_v41 = vor.u32 %v1212_v34, %v1208_v33  ;;  %v1300_v29 = vor.u32 %v1299_v45, %v1295_v49  ;;  %v1241_v63 = vunpack.c.l.b16 %v1079_v17  ;;  %v1587_v31 = vsel %vm800_vm4, %v1052_v12, %v1487_v6  ;;  %v1065_v35 = vld [vmem:[#allocation2 + $0x28] sm:$0x3]  ;;  %v1087_v13 = vld [vmem:[#allocation2 + $0x20] sm:$0x3]  ;;  %v1088_v6 = vld [vmem:[#allocation2 + $0x24] sm:$0x3] }
 0x10b   : > { %v1027_v28 = vld [vmem:[#allocation2 + $0x30] sm:$0x1]  ;;  %v1253_v53 = vor.u32 %v1252_v42, %v1248_v57  ;;  %v1591_v46 = vsel %vm1506_vm3, %v1587_v31, %v1590_v20  ;;  %v1307_v25 = vor.u32 %v1306_v37, %v1302_v36  ;;  %v1240_v30 = vunpack.c.l.b16 %v1078_v10  ;;  %v1080_v55 = vld [vmem:[#allocation2 + $0x48] sm:$0x7]  ;;  %v1083_v57 = vld [vmem:[#allocation2 + $0xc] sm:$0x3] }
 0x10c   : > { %v1030_v58 = vld [vmem:[#allocation2 + $0x34] sm:$0x1]  ;;  %v1455_v18 = vrot.slane %v1213_v41, 4  ;;  %v1028_v52 = vsel %vm4364_vm15, 0, %v1027_v28  ;;  %v1454_v62 = vrot.slane %v1069_v47, 6  ;;  %v1309_v1 = vshrl.u32 %v4657_v61, 16 }
 0x10d   : > { %v1031_v0 = vsel %vm4364_vm15, 0, %v1030_v58  ;;  %v1456_v16 = vrot.slane %v1253_v53, 2  ;;  %1029 = vst [vmem:[#allocation2 + $0x30] sm:$0x1] %v1028_v52  ;;  %v1349_v59 = vshrl.u32 %v4629_v5, 16  ;;  %v1359_v2 = vunpack.c.l.b16 %v1107_v43  ;;  %v3996_v43 = vld [vmem:[%s5038_s3 + $0x2b8] sm:$0xff] }
 0x10e   : > { %v1399_v39 = vunpack.c.l.b16 %v1111_v48  ;;  %1032 = vst [vmem:[#allocation2 + $0x34] sm:$0x1] %v1031_v0  ;;  %v1347_v4 = vor.u32 %v1346_v21, %v1342_v50  ;;  %v1510_v60 = vsel %vm800_vm4, %v1065_v35, %v1454_v62  ;;  %v4711_v56 = vpack.c.b16 %v1241_v63, %v1241_v63  ;;  %v1082_v49 = vld [vmem:[#allocation2 + $0x8] sm:$0x3]  ;;  %v4716_v21 = vld [vmem:[#allocation2 + $0x40] sm:$0x3] }
 0x10f   : > { %v1513_v3 = vsel %vm1502_vm1, %v1455_v18, %v1456_v16  ;;  %1879 = vst [vmem:[#allocation1 + $0x3] ss:$4 sm:$0xff] %v1591_v46  ;;  %v1470_v45 = vrot.slane %v1300_v29, 4  ;;  %v1314_v8 = vor.u32 %v1313_v32, %v1309_v1  ;;  %v1354_v61 = vor.u32 %v1353_v24, %v1349_v59  ;;  %v1084_v26 = vld [vmem:[#allocation2 + $0x10] sm:$0x3] }
 0x110   : > { %v1514_v5 = vsel %vm1506_vm3, %v1510_v60, %v1513_v3  ;;  %v1459_v14 = vrot.slane %v1333_v7, 2  ;;  %v1471_v15 = vrot.slane %v1340_v38, 2  ;;  %v1482_v19 = vrot.slane %v1307_v25, 4  ;;  %v1112_v20 = vld [vmem:[#allocation2 + $0x44] sm:$0x7]  ;;  %v3988_v38 = vld [vmem:[%s5038_s3 + $0x278] sm:$0xff] }
 0x111   : > { %v4714_v36 = vpack.c.b16 %v1240_v30, %v1240_v30  ;;  %1881 = vst [vmem:[#allocation1 + $0x20] ss:$4 sm:$0xff] %v1514_v5  ;;  %v1481_v50 = vrot.slane %v1087_v13, 6  ;;  %v4718_v9 = vpack.c.b16 %v1359_v2, %v1359_v2  ;;  %v4720_v27 = vpack.c.b16 %v1399_v39, %v1399_v39  ;;  %v1113_v58 = vld [vmem:[#allocation2 + $0x48] sm:$0x7]  ;;  %v4004_v39 = vld [vmem:[%s5038_s3 + $0x2f8] sm:$0xff] }
 0x112   : > { %v1242_v22 = vunpack.c.l.b16 %v1080_v55  ;;  %v1520_v24 = vsel %vm1502_vm1, %v1458_v23, %v1459_v14  ;;  %v1545_v51 = vsel %vm800_vm4, %v1082_v49, %v1469_v11  ;;  %v1483_v33 = vrot.slane %v1347_v4, 2  ;;  %v3979_v30 = vld [vmem:[%s5038_s3 + $0x230] sm:$0xff]  ;;  %v1071_v1 = vld [vmem:[#allocation2 + $0x44] sm:$0x3] }
 0x113   : > { %v1264_v34 = vshll.u32 %v4711_v56, 16  ;;  %v1548_v17 = vsel %vm1502_vm1, %v1470_v45, %v1471_v15  ;;  %v1493_v12 = vrot.slane %v1088_v6, 6  ;;  %v1494_v37 = vrot.slane %v1314_v8, 4  ;;  %v3987_v13 = vld [vmem:[%s5038_s3 + $0x270] sm:$0xff] }
 0x114   : > { %v1495_v32 = vrot.slane %v1354_v61, 2  ;;  %v1075_v42 = vld [vmem:[#allocation2 + $0x30] sm:$0x7]  ;;  %v1576_v23 = vsel %vm1502_vm1, %v1482_v19, %v1483_v33  ;;  %v1257_v54 = vshll.u32 %v4714_v36, 16  ;;  %v1466_v11 = vrot.slane %v4716_v21, 6  ;;  %v3999_v21 = vld [vmem:[%s5038_s3 + $0x2d0] sm:$0xff] }
 0x115   : > { %v1201_v7 = vunpack.c.l.b16 %v1075_v42  ;;  %v1521_v47 = vsel %vm1506_vm3, %v4699_v40, %v1520_v24  ;;  %v1370_v10 = vshll.u32 %v4718_v9, 16  ;;  %v1410_v41 = vshll.u32 %v4720_v27, 16  ;;  %v1108_v0 = vld [vmem:[#allocation2 + $0x30] sm:$0x7]  ;;  %v1109_v3 = vld [vmem:[#allocation2 + $0x34] sm:$0x7] }
 0x116   : > { %v4743_v28 = vpack.c.b16 %v1242_v22, %v1242_v22  ;;  %v1888_v29 = vld.sshfl [vmem:[#allocation1] sm:$0xff pattern:$0x73625140]  ;;  %v1549_v48 = vsel %vm1506_vm3, %v1545_v51, %v1548_v17  ;;  %v1573_v53 = vsel %vm800_vm4, %v1083_v57, %v1481_v50  ;;  %v1266_v31 = vrot.slane %v1264_v34, 1  ;;  %v4003_v50 = vld [vmem:[%s5038_s3 + $0x2f0] sm:$0xff] }
 0x117   : > { %v1205_v63 = vpack.c.b16 %v1201_v7, %v1201_v7  ;;  %2704 = vmatmul.bf16.vlgmr.msrb.gmra.mxu0 %v1888_v29  ;;  %v1889_v40 = vld.sshfl [vmem:[#allocation1 + $0x8] sm:$0xff pattern:$0x73625140]  ;;  %v1577_v35 = vsel %vm1506_vm3, %v1573_v53, %v1576_v23  ;;  %v1601_v18 = vsel %vm800_vm4, %v1084_v26, %v1493_v12  ;;  %v1604_v52 = vsel %vm1502_vm1, %v1494_v37, %v1495_v32  ;;  %v1890_v25 = vld.sshfl [vmem:[#allocation1 + $0x10] sm:$0xff pattern:$0x73625140] }
 0x118   : > { %v1400_v46 = vunpack.c.l.b16 %v1112_v20  ;;  %2718 = vmatmul.bf16.vlgmr.msrb.gmra.mxu1 %v1889_v40  ;;  %2808 = vmatpush.bf16.msrb.mxu0 %v3980_v44  ;;  %v1255_v62 = vshrl.u32 %v4714_v36, 16  ;;  %v1259_v16 = vrot.slane %v1257_v54, 1  ;;  %v1262_v2 = vshrl.u32 %v4711_v56, 16  ;;  %v3995_v56 = vld [vmem:[%s5038_s3 + $0x2b0] sm:$0xff]  ;;  %v1067_v24 = vld [vmem:[#allocation2 + $0x30] sm:$0x3] }
 0x119   : > { %v1224_v59 = vshll.u32 %v1205_v63, 16  ;;  %2732 = vmatmul.bf16.vlgmr.msrb.gmra.mxu2 %v1890_v25  ;;  %2822 = vmatpush.bf16.msrb.mxu1 %v3988_v38  ;;  %v1368_v4 = vshrl.u32 %v4718_v9, 16  ;;  %v1372_v60 = vrot.slane %v1370_v10, 1  ;;  %v1271_v55 = vshll.u32 %v4743_v28, 16  ;;  %v3978_v9 = vld [vmem:[%s5038_s3 + $0x228] sm:$0xff]  ;;  %v3977_v10 = vld [vmem:[%s5038_s3 + $0x220] sm:$0xff] }
 0x11a   : > { %v1401_v49 = vunpack.c.l.b16 %v1113_v58  ;;  %2836 = vmatpush.bf16.msrb.mxu2 %v3996_v43  ;;  %v1222_v45 = vshrl.u32 %v1205_v63, 16  ;;  %v1267_v8 = vor.u32 %v1266_v31, %v1262_v2  ;;  %v1360_v61 = vunpack.c.l.b16 %v1108_v0  ;;  %v1891_v5 = vld.sshfl [vmem:[#allocation1 + $0x18] sm:$0xff pattern:$0x73625140]  ;;  %v3994_v26 = vld [vmem:[%s5038_s3 + $0x2a8] sm:$0xff]  ;;  %v3985_v53 = vld [vmem:[%s5038_s3 + $0x260] sm:$0xff] }
 0x11b   : > { %v1226_v6 = vrot.slane %v1224_v59, 1  ;;  %v1605_v14 = vsel %vm1506_vm3, %v1601_v18, %v1604_v52  ;;  %v1408_v15 = vshrl.u32 %v4720_v27, 16  ;;  %v1412_v19 = vrot.slane %v1410_v41, 1  ;;  %1896 = vst [vmem:[#allocation1] ss:$4 sm:$0xff] %v1521_v47  ;;  %2746 = vmatmul.bf16.vlgmr.msrb.gmra.mxu3 %v1891_v5  ;;  %v3986_v27 = vld [vmem:[%s5038_s3 + $0x268] sm:$0xff] }
 0x11c   : > { %v4771_v36 = vpack.c.b16 %v1400_v46, %v1400_v46  ;;  %2809 = vmatpush.bf16.msrb.mxu0 %v3979_v30  ;;  %v4779_v22 = vor.u32 %v1259_v16, %v1255_v62  ;;  %v1361_v57 = vunpack.c.l.b16 %v1109_v3  ;;  %1897 = vst [vmem:[#allocation1 + $0x1] ss:$4 sm:$0xff] %v1549_v48  ;;  %2850 = vmatpush.bf16.msrb.mxu3 %v4004_v39  ;;  %v1273_v34 = vrot.slane %v1271_v55, 1  ;;  %v1074_v37 = vld [vmem:[#allocation2 + $0x2c] sm:$0x7]  ;;  %v4002_v47 = vld [vmem:[%s5038_s3 + $0x2e8] sm:$0xff] }
 0x11d   : > { %v1227_v51 = vor.u32 %v1226_v6, %v1222_v45  ;;  %2823 = vmatpush.bf16.msrb.mxu1 %v3987_v13  ;;  %v4787_v33 = vor.u32 %v1372_v60, %v1368_v4  ;;  %v4789_v17 = vpack.c.b16 %v1401_v49, %v1401_v49  ;;  %v1478_v12 = vrot.slane %v1071_v1, 6  ;;  %1898 = vst [vmem:[#allocation1 + $0x2] ss:$4 sm:$0xff] %v1577_v35  ;;  %v1076_v23 = vld [vmem:[#allocation2 + $0x34] sm:$0x7]  ;;  %v4001_v60 = vld [vmem:[%s5038_s3 + $0x2e0] sm:$0xff] }
 0x11e   : > { %2837 = vmatpush.bf16.msrb.mxu2 %v3995_v56  ;;  %v4791_v32 = vpack.c.b16 %v1360_v61, %v1360_v61  ;;  %v1480_v44 = vrot.slane %v1267_v8, 2  ;;  %1899 = vst [vmem:[#allocation1 + $0x3] ss:$4 sm:$0xff] %v1605_v14  ;;  %v1200_v54 = vunpack.c.l.b16 %v1074_v37  ;;  %v4793_v20 = vor.u32 %v1412_v19, %v1408_v15  ;;  %v1110_v63 = vld [vmem:[#allocation2 + $0x38] sm:$0x7]  ;;  %v3976_v1 = vld [vmem:[%s5038_s3 + $0x218] sm:$0xff] }
 0x11f   : > { %v1479_v42 = vrot.slane %v1227_v51, 4  ;;  %v1417_v7 = vshll.u32 %v4771_v36, 16  ;;  %v1566_v38 = vsel %vm800_vm4, %v1067_v24, %v1478_v12  ;;  %v1202_v41 = vunpack.c.l.b16 %v1076_v23  ;;  %v1114_v31 = vld [vmem:[#allocation2 + $0x4c] sm:$0x7]  ;;  %v1072_v62 = vld [vmem:[#allocation2 + $0x48] sm:$0x3] }
 0x120   : > { %2810 = vmatpush.bf16.msrb.mxu0 %v3978_v9  ;;  %v1269_v29 = vshrl.u32 %v4743_v28, 16  ;;  %v4804_v43 = vpack.c.b16 %v1361_v57, %v1361_v57  ;;  %2851 = vmatpush.bf16.msrb.mxu3 %v4003_v50  ;;  %v1204_v58 = vpack.c.b16 %v1200_v54, %v1200_v54  ;;  %v1468_v40 = vrot.slane %v4779_v22, 2  ;;  %v3993_v28 = vld [vmem:[%s5038_s3 + $0x2a0] sm:$0xff]  ;;  %v3984_v3 = vld [vmem:[%s5038_s3 + $0x258] sm:$0xff]  ;;  %v3975_v50 = vld [vmem:[%s5038_s3 + $0x210] sm:$0xff] }
 0x121   : > { %v1569_v48 = vsel %vm1502_vm1, %v1479_v42, %v1480_v44  ;;  %2824 = vmatpush.bf16.msrb.mxu1 %v3986_v27  ;;  %v1415_v35 = vshrl.u32 %v4771_v36, 16  ;;  %v1206_v52 = vpack.c.b16 %v1202_v41, %v1202_v41  ;;  %v1377_v46 = vshll.u32 %v4791_v32, 16  ;;  %v3992_v56 = vld [vmem:[%s5038_s3 + $0x298] sm:$0xff]  ;;  %v3983_v24 = vld [vmem:[%s5038_s3 + $0x250] sm:$0xff] }
 0x122   : > { %v1570_v18 = vsel %vm1506_vm3, %v1566_v38, %v1569_v48  ;;  %2838 = vmatpush.bf16.msrb.mxu2 %v3994_v26  ;;  %v1274_v0 = vor.u32 %v1273_v34, %v1269_v29  ;;  %v1424_v25 = vshll.u32 %v4789_v17, 16  ;;  %v1217_v30 = vshll.u32 %v1204_v58, 16  ;;  %v4000_v19 = vld [vmem:[%s5038_s3 + $0x2d8] sm:$0xff]  ;;  %v1066_v51 = vld [vmem:[#allocation2 + $0x2c] sm:$0x3] }
 0x123   : > { %1885 = vst [vmem:[#allocation1 + $0x22] ss:$4 sm:$0xff] %v1570_v18  ;;  %v4818_v16 = vrot.slane %v1417_v7, 1  ;;  %v1231_v59 = vshll.u32 %v1206_v52, 16  ;;  %v1362_v2 = vunpack.c.l.b16 %v1110_v63  ;;  %v1402_v39 = vunpack.c.l.b16 %v1114_v31  ;;  %v1068_v12 = vld [vmem:[#allocation2 + $0x34] sm:$0x3] }
 0x124   : > { %2811 = vmatpush.bf16.msrb.mxu0 %v3977_v10  ;;  %v1384_v13 = vshll.u32 %v4804_v43, 16  ;;  %v1422_v4 = vshrl.u32 %v4789_v17, 16  ;;  %2852 = vmatpush.bf16.msrb.mxu3 %v4002_v47  ;;  %v1215_v55 = vshrl.u32 %v1204_v58, 16  ;;  %v1219_v49 = vrot.slane %v1217_v30, 1  ;;  %v1106_v18 = vld [vmem:[#allocation2 + $0x4c] sm:$0x3] }
 0x125   : > { %2825 = vmatpush.bf16.msrb.mxu1 %v3985_v53  ;;  %v1229_v45 = vshrl.u32 %v1206_v52, 16  ;;  %v1233_v6 = vrot.slane %v1231_v59, 1  ;;  %v1366_v8 = vpack.c.b16 %v1362_v2, %v1362_v2  ;;  %v1406_v61 = vpack.c.b16 %v1402_v39, %v1402_v39  ;;  %v1103_v52 = vld [vmem:[#allocation2 + $0x40] sm:$0x3]  ;;  %v1104_v30 = vld [vmem:[#allocation2 + $0x44] sm:$0x3] }
 0x126   : > { %2839 = vmatpush.bf16.msrb.mxu2 %v3993_v28  ;;  %v1379_v5 = vrot.slane %v1377_v46, 1  ;;  %v1426_v14 = vrot.slane %v1424_v25, 1  ;;  %v1490_v15 = vrot.slane %v1072_v62, 6  ;;  %v1220_v9 = vor.u32 %v1219_v49, %v1215_v55  ;;  %v3990_v46 = vld [vmem:[%s5038_s3 + $0x288] sm:$0xff]  ;;  %v1105_v62 = vld [vmem:[#allocation2 + $0x48] sm:$0x3] }
 0x127   : > { %v1375_v22 = vshrl.u32 %v4791_v32, 16  ;;  %v1234_v57 = vor.u32 %v1233_v6, %v1229_v45  ;;  %v1389_v27 = vshrl.u32 %v1366_v8, 16  ;;  %v1391_v26 = vshll.u32 %v1366_v8, 16  ;;  %v3991_v32 = vld [vmem:[%s5038_s3 + $0x290] sm:$0xff]  ;;  %v1101_v17 = vld [vmem:[#allocation2 + $0x38] sm:$0x3] }
 0x128   : > { %2812 = vmatpush.bf16.msrb.mxu0 %v3976_v1  ;;  %v1386_v34 = vrot.slane %v1384_v13, 1  ;;  %2853 = vmatpush.bf16.msrb.mxu3 %v4001_v60  ;;  %v1467_v37 = vrot.slane %v1220_v9, 4  ;;  %v1429_v42 = vshrl.u32 %v1406_v61, 16  ;;  %v1431_v44 = vshll.u32 %v1406_v61, 16  ;;  %v1098_v59 = vld [vmem:[#allocation2 + $0x2c] sm:$0x3] }
 0x129   : > { %2826 = vmatpush.bf16.msrb.mxu1 %v3984_v3  ;;  %v1382_v23 = vshrl.u32 %v4804_v43, 16  ;;  %v1492_v54 = vrot.slane %v1274_v0, 2  ;;  %v1491_v7 = vrot.slane %v1234_v57, 4  ;;  %v1393_v38 = vrot.slane %v1391_v26, 1  ;;  %v3974_v43 = vld [vmem:[%s5038_s3 + $0x208] sm:$0xff]  ;;  %v3989_v8 = vld [vmem:[%s5038_s3 + $0x280] sm:$0xff] }
 0x12a   : > { %2840 = vmatpush.bf16.msrb.mxu2 %v3992_v56  ;;  %v1380_v47 = vor.u32 %v1379_v5, %v1375_v22  ;;  %v1538_v10 = vsel %vm800_vm4, %v1066_v51, %v1466_v11  ;;  %v1541_v41 = vsel %vm1502_vm1, %v1467_v37, %v1468_v40  ;;  %v1433_v29 = vrot.slane %v1431_v44, 1  ;;  %v3982_v11 = vld [vmem:[%s5038_s3 + $0x248] sm:$0xff]  ;;  %v1099_v3 = vld [vmem:[#allocation2 + $0x30] sm:$0x3]  ;;  %v1100_v55 = vld [vmem:[#allocation2 + $0x34] sm:$0x3] }
 0x12b   : > { %v1542_v48 = vsel %vm1506_vm3, %v1538_v10, %v1541_v41  ;;  %v1594_v53 = vsel %vm800_vm4, %v1068_v12, %v1490_v15  ;;  %v1597_v58 = vsel %vm1502_vm1, %v1491_v7, %v1492_v54  ;;  %v1394_v63 = vor.u32 %v1393_v38, %v1389_v27  ;;  %v3997_v61 = vld [vmem:[%s5038_s3 + $0x2c0] sm:$0xff]  ;;  %v4012_v5 = vld [vmem:[%s5038_s3 + $0x338] sm:$0xff]  ;;  %v4011_v7 = vld [vmem:[%s5038_s3 + $0x330] sm:$0xff] }
 0x12c   : > { %2813 = vmatpush.bf16.msrb.mxu0 %v3975_v50  ;;  %v1387_v31 = vor.u32 %v1386_v34, %v1382_v23  ;;  %2854 = vmatpush.bf16.msrb.mxu3 %v4000_v19  ;;  %v1598_v40 = vsel %vm1506_vm3, %v1594_v53, %v1597_v58  ;;  %1883 = vst [vmem:[#allocation1 + $0x21] ss:$4 sm:$0xff] %v1542_v48  ;;  %v1461_v25 = vrot.slane %v4787_v33, 4  ;;  %v1473_v2 = vrot.slane %v1380_v47, 4  ;;  %v3998_v33 = vld [vmem:[%s5038_s3 + $0x2c8] sm:$0xff]  ;;  %v4020_v9 = vld [vmem:[%s5038_s3 + $0x378] sm:$0xff] }
 0x12d   : > { %2827 = vmatpush.bf16.msrb.mxu1 %v3983_v24  ;;  %v1434_v28 = vor.u32 %v1433_v29, %v1429_v42  ;;  %v1420_v0 = vor.u32 %v4818_v16, %v1415_v35  ;;  %1887 = vst [vmem:[#allocation1 + $0x23] ss:$4 sm:$0xff] %v1598_v40  ;;  %v1427_v1 = vor.u32 %v1426_v14, %v1422_v4  ;;  %v1496_v39 = vrot.slane %v1106_v18, 6  ;;  %v3973_v35 = vld [vmem:[%s5038_s3 + $0x200] sm:$0xff]  ;;  %v4028_v22 = vld [vmem:[%s5038_s3 + $0x3b8] sm:$0xff]  ;;  %v4019_v38 = vld [vmem:[%s5038_s3 + $0x370] sm:$0xff] }
 0x12e   : > { %2841 = vmatpush.bf16.msrb.mxu2 %v3991_v32  ;;  %v1497_v36 = vrot.slane %v1394_v63, 4  ;;  %v1462_v16 = vrot.slane %v4793_v20, 2  ;;  %v1485_v60 = vrot.slane %v1387_v31, 4  ;;  %v3981_v4 = vld [vmem:[%s5038_s3 + $0x240] sm:$0xff]  ;;  %v1460_v56 = vrot.slane %v1103_v52, 6  ;;  %v4036_v24 = vld [vmem:[%s5038_s3 + $0x3f8] sm:$0xff] }
 0x12f   : > { %v1498_v13 = vrot.slane %v1434_v28, 2  ;;  %v1474_v49 = vrot.slane %v1420_v0, 2  ;;  %v1472_v20 = vrot.slane %v1104_v30, 6  ;;  %v1486_v6 = vrot.slane %v1427_v1, 2  ;;  %v4027_v47 = vld [vmem:[%s5038_s3 + $0x3b0] sm:$0xff]  ;;  %v4010_v41 = vld [vmem:[%s5038_s3 + $0x328] sm:$0xff] }
 0x130   : > { %2814 = vmatpush.bf16.msrb.mxu0 %v3974_v43  ;;  %2855 = vmatpush.bf16.msrb.mxu3 %v3999_v21  ;;  %v1527_v45 = vsel %vm1502_vm1, %v1461_v25, %v1462_v16  ;;  %v1484_v14 = vrot.slane %v1105_v62, 6  ;;  %v1608_v19 = vsel %vm800_vm4, %v1101_v17, %v1496_v39  ;;  %v1524_v51 = vsel %vm800_vm4, %v1098_v59, %v1460_v56  ;;  %v4035_v10 = vld [vmem:[%s5038_s3 + $0x3f0] sm:$0xff]  ;;  %v4018_v29 = vld [vmem:[%s5038_s3 + $0x368] sm:$0xff]  ;;  %v4009_v53 = vld [vmem:[%s5038_s3 + $0x320] sm:$0xff] }
 0x131   : > { %2828 = vmatpush.bf16.msrb.mxu1 %v3982_v11  ;;  %v1555_v15 = vsel %vm1502_vm1, %v1473_v2, %v1474_v49  ;;  %v1611_v50 = vsel %vm1502_vm1, %v1497_v36, %v1498_v13  ;;  %v1583_v57 = vsel %vm1502_vm1, %v1485_v60, %v1486_v6  ;;  %v1528_v34 = vsel %vm1506_vm3, %v1524_v51, %v1527_v45  ;;  %v4026_v43 = vld [vmem:[%s5038_s3 + $0x3a8] sm:$0xff]  ;;  %v4017_v58 = vld [vmem:[%s5038_s3 + $0x360] sm:$0xff]  ;;  %v4008_v11 = vld [vmem:[%s5038_s3 + $0x318] sm:$0xff] }
 0x132   : > { %2842 = vmatpush.bf16.msrb.mxu2 %v3990_v46  ;;  %v1552_v12 = vsel %vm800_vm4, %v1099_v3, %v1472_v20  ;;  %v1580_v23 = vsel %vm800_vm4, %v1100_v55, %v1484_v14  ;;  %v1612_v54 = vsel %vm1506_vm3, %v1608_v19, %v1611_v50  ;;  %v4034_v48 = vld [vmem:[%s5038_s3 + $0x3e8] sm:$0xff]  ;;  %v4025_v63 = vld [vmem:[%s5038_s3 + $0x3a0] sm:$0xff]  ;;  %v4016_v40 = vld [vmem:[%s5038_s3 + $0x358] sm:$0xff] }
 0x133   : > { %v1556_v44 = vsel %vm1506_vm3, %v1552_v12, %v1555_v15  ;;  %v1584_v32 = vsel %vm1506_vm3, %v1580_v23, %v1583_v57  ;;  %v4033_v31 = vld [vmem:[%s5038_s3 + $0x3e0] sm:$0xff]  ;;  %v1905_v18 = vld.sshfl [vmem:[#allocation1 + $0x8] sm:$0xff pattern:$0x73625140]  ;;  %v4024_v28 = vld [vmem:[%s5038_s3 + $0x398] sm:$0xff] }
 0x134   : > { %2815 = vmatpush.bf16.msrb.mxu0 %v3973_v35  ;;  %2856 = vmatpush.bf16.msrb.mxu3 %v3998_v33  ;;  %v1892_v27 = vld.sshfl [vmem:[#allocation1 + $0x20] sm:$0xff pattern:$0x73625140]  ;;  %v1893_v26 = vld.sshfl [vmem:[#allocation1 + $0x28] sm:$0xff pattern:$0x73625140] }
 0x135   : > { %2829 = vmatpush.bf16.msrb.mxu1 %v3981_v4  ;;  %2760 = vmatmul.bf16.vlgmr.msra.gmra.mxu0 %v1892_v27  ;;  %v1894_v37 = vld.sshfl [vmem:[#allocation1 + $0x30] sm:$0xff pattern:$0x73625140]  ;;  %v1895_v42 = vld.sshfl [vmem:[#allocation1 + $0x38] sm:$0xff pattern:$0x73625140] }
 0x136   : > { %2774 = vmatmul.bf16.vlgmr.msra.gmra.mxu1 %v1893_v26  ;;  %2788 = vmatmul.bf16.vlgmr.msra.gmra.mxu2 %v1894_v37  ;;  %1900 = vst [vmem:[#allocation1 + $0x20] ss:$4 sm:$0xff] %v1528_v34  ;;  %v1904_v21 = vld.sshfl [vmem:[#allocation1] sm:$0xff pattern:$0x73625140]  ;;  %v4032_v52 = vld [vmem:[%s5038_s3 + $0x3d8] sm:$0xff] }
 0x137   : > { %2802 = vmatmul.bf16.vlgmr.msra.gmra.mxu3 %v1895_v42  ;;  %1901 = vst [vmem:[#allocation1 + $0x21] ss:$4 sm:$0xff] %v1556_v44  ;;  %2843 = vmatpush.bf16.msrb.mxu2 %v3989_v8  ;;  %v1906_v0 = vld.sshfl [vmem:[#allocation1 + $0x10] sm:$0xff pattern:$0x73625140]  ;;  %v4006_v59 = vld [vmem:[%s5038_s3 + $0x308] sm:$0xff] }
 0x138   : > { %2864 = vmatpush.bf16.msra.mxu0 %v4012_v5  ;;  %1902 = vst [vmem:[#allocation1 + $0x22] ss:$4 sm:$0xff] %v1584_v32  ;;  %2857 = vmatpush.bf16.msrb.mxu3 %v3997_v61  ;;  %v1907_v46 = vld.sshfl [vmem:[#allocation1 + $0x18] sm:$0xff pattern:$0x73625140]  ;;  %v4007_v25 = vld [vmem:[%s5038_s3 + $0x310] sm:$0xff] }
 0x139   : > { %2878 = vmatpush.bf16.msra.mxu1 %v4020_v9  ;;  %1903 = vst [vmem:[#allocation1 + $0x23] ss:$4 sm:$0xff] %v1612_v54  ;;  %v4015_v30 = vld [vmem:[%s5038_s3 + $0x350] sm:$0xff]  ;;  %v4014_v2 = vld [vmem:[%s5038_s3 + $0x348] sm:$0xff]  ;;  %v4005_v13 = vld [vmem:[%s5038_s3 + $0x300] sm:$0xff] }
 0x13a   : > { %v4023_v62 = vld [vmem:[%s5038_s3 + $0x390] sm:$0xff]  ;;  %v4022_v39 = vld [vmem:[%s5038_s3 + $0x388] sm:$0xff]  ;;  %v4013_v35 = vld [vmem:[%s5038_s3 + $0x340] sm:$0xff] }
 0x13b   : > { %2892 = vmatpush.bf16.msra.mxu2 %v4028_v22  ;;  %v4031_v1 = vld [vmem:[%s5038_s3 + $0x3d0] sm:$0xff]  ;;  %v4030_v36 = vld [vmem:[%s5038_s3 + $0x3c8] sm:$0xff]  ;;  %v4021_v16 = vld [vmem:[%s5038_s3 + $0x380] sm:$0xff] }
 0x13c   : > { %2906 = vmatpush.bf16.msra.mxu3 %v4036_v24  ;;  %2865 = vmatpush.bf16.msra.mxu0 %v4011_v7  ;;  %v4029_v60 = vld [vmem:[%s5038_s3 + $0x3c0] sm:$0xff]  ;;  %v4044_v8 = vld [vmem:[%s5040_s5 + $0x38] sm:$0xff]  ;;  %v4043_v5 = vld [vmem:[%s5040_s5 + $0x30] sm:$0xff] }
 0x13d   : > { %2879 = vmatpush.bf16.msra.mxu1 %v4019_v38  ;;  %v4054_v61 = vld [vmem:[%s5039_s4] ss:$0 sm:$0xff]  ;;  %v4042_v22 = vld [vmem:[%s5040_s5 + $0x28] sm:$0xff]  ;;  %v4040_v38 = vld [vmem:[%s5040_s5 + $0x18] sm:$0xff] }
 0x13e   : > { %v4041_v27 = vld [vmem:[%s5040_s5 + $0x20] sm:$0xff] }
 0x13f   : > { %2893 = vmatpush.bf16.msra.mxu2 %v4027_v47 }
 0x140   : > { %2907 = vmatpush.bf16.msra.mxu3 %v4035_v10  ;;  %2866 = vmatpush.bf16.msra.mxu0 %v4010_v41  ;;  %v1908_v33 = vld.sshfl [vmem:[#allocation1 + $0x20] sm:$0xff pattern:$0x73625140]  ;;  %v1909_v17 = vld.sshfl [vmem:[#allocation1 + $0x28] sm:$0xff pattern:$0x73625140] }
 0x141   : > { %2880 = vmatpush.bf16.msra.mxu1 %v4018_v29  ;;  %v1910_v4 = vld.sshfl [vmem:[#allocation1 + $0x30] sm:$0xff pattern:$0x73625140]  ;;  %v1911_v3 = vld.sshfl [vmem:[#allocation1 + $0x38] sm:$0xff pattern:$0x73625140] }
 0x143   : > { %2894 = vmatpush.bf16.msra.mxu2 %v4026_v43  ;;  %v4039_v43 = vld [vmem:[%s5040_s5 + $0x10] sm:$0xff] }
 0x144   : > { %2908 = vmatpush.bf16.msra.mxu3 %v4034_v48  ;;  %2867 = vmatpush.bf16.msra.mxu0 %v4009_v53 }
 0x145   : > { %2881 = vmatpush.bf16.msra.mxu1 %v4017_v58  ;;  %2816 = vmatmul.bf16.vlgmr.msrb.gmra.mxu0 %v1904_v21 }
 0x146   : > { %2830 = vmatmul.bf16.vlgmr.msrb.gmra.mxu1 %v1905_v18  ;;  %2844 = vmatmul.bf16.vlgmr.msrb.gmra.mxu2 %v1906_v0  ;;  %v4037_v0 = vld [vmem:[%s5040_s5] sm:$0xff] }
 0x147   : > { %2895 = vmatpush.bf16.msra.mxu2 %v4025_v63  ;;  %2858 = vmatmul.bf16.vlgmr.msrb.gmra.mxu3 %v1907_v46 }
 0x148   : > { %2909 = vmatpush.bf16.msra.mxu3 %v4033_v31  ;;  %2868 = vmatpush.bf16.msra.mxu0 %v4008_v11 }
 0x149   : > { %2882 = vmatpush.bf16.msra.mxu1 %v4016_v40  ;;  %v4038_v40 = vld [vmem:[%s5040_s5 + $0x8] sm:$0xff] }
 0x14b   : > { %2896 = vmatpush.bf16.msra.mxu2 %v4024_v28 }
 0x14c   : > { %2910 = vmatpush.bf16.msra.mxu3 %v4032_v52  ;;  %2869 = vmatpush.bf16.msra.mxu0 %v4007_v25 }
 0x14d   : > { %2883 = vmatpush.bf16.msra.mxu1 %v4015_v30 }
 0x14f   : > { %2897 = vmatpush.bf16.msra.mxu2 %v4023_v62 }
 0x150   : > { %2911 = vmatpush.bf16.msra.mxu3 %v4031_v1  ;;  %2870 = vmatpush.bf16.msra.mxu0 %v4006_v59 }
 0x151   : > { %2884 = vmatpush.bf16.msra.mxu1 %v4014_v2 }
 0x153   : > { %2898 = vmatpush.bf16.msra.mxu2 %v4022_v39 }
 0x154   : > { %2912 = vmatpush.bf16.msra.mxu3 %v4030_v36  ;;  %2871 = vmatpush.bf16.msra.mxu0 %v4005_v13 }
 0x155   : > { %2885 = vmatpush.bf16.msra.mxu1 %v4013_v35 }
 0x157   : > { %2899 = vmatpush.bf16.msra.mxu2 %v4021_v16  ;;  %2872 = vmatmul.bf16.vlgmr.msra.gmra.mxu0 %v1908_v33 }
 0x158   : > { %2913 = vmatpush.bf16.msra.mxu3 %v4029_v60  ;;  %2886 = vmatmul.bf16.vlgmr.msra.gmra.mxu1 %v1909_v17 }
 0x159   : > { %2995 = vmatpush.bf16.msrb.mxu0 %v4044_v8 }
 0x15a   : > { %2900 = vmatmul.bf16.vlgmr.msra.gmra.mxu2 %v1910_v4 }
 0x15b   : > { %2914 = vmatmul.bf16.vlgmr.msra.gmra.mxu3 %v1911_v3 }
 0x15d   : > { %2996 = vmatpush.bf16.msrb.mxu0 %v4043_v5 }
 0x161   : > { %2997 = vmatpush.bf16.msrb.mxu0 %v4042_v22  ;;  %v4055_v22 = vld [vmem:[%s5041_s6] ss:$0 sm:$0xff] }
 0x165   : > { %2998 = vmatpush.bf16.msrb.mxu0 %v4041_v27 }
 0x169   : > { %2999 = vmatpush.bf16.msrb.mxu0 %v4040_v38 }
 0x16d   : > { %3000 = vmatpush.bf16.msrb.mxu0 %v4039_v43 }
 0x171   : > { %3001 = vmatpush.bf16.msrb.mxu0 %v4038_v40 }
 0x175   : > { %3002 = vmatpush.bf16.msrb.mxu0 %v4037_v0 }
 0x194   : > { %v2705_v55 = vpop.f32.mrf.mxu0 }
 0x195   : > { %v2719_v49 = vpop.f32.mrf.mxu1  ;;  %v2706_v9 = vadd.f32 %v4054_v61, %v2705_v55 }
 0x197   : > { %v2720_v24 = vadd.f32 %v2719_v49, %v2706_v9 }
 0x19c   : > { %v2733_v56 = vpop.f32.mrf.mxu2  ;;  %v2707_v20 = vpop.f32.mrf.mxu0 }
 0x19d   : > { %v2721_v6 = vpop.f32.mrf.mxu1  ;;  %v2734_v26 = vadd.f32 %v2733_v56, %v2720_v24  ;;  %v2708_v34 = vadd.f32 %v4054_v61, %v2707_v20 }
 0x19e   : > { %v2747_v45 = vpop.f32.mrf.mxu3 }
 0x19f   : > { %v2748_v42 = vadd.f32 %v2747_v45, %v2734_v26  ;;  %v2722_v44 = vadd.f32 %v2721_v6, %v2708_v34 }
 0x1a4   : > { %v2735_v14 = vpop.f32.mrf.mxu2 }
 0x1a5   : > { %v2736_v23 = vadd.f32 %v2735_v14, %v2722_v44 }
 0x1a6   : > { %v2749_v15 = vpop.f32.mrf.mxu3 }
 0x1a7   : > { %v2750_v41 = vadd.f32 %v2749_v15, %v2736_v23 }
 0x1b2   : > { %v2761_v19 = vpop.f32.mrf.mxu0 }
 0x1b3   : > { %v2775_v50 = vpop.f32.mrf.mxu1  ;;  %v2762_v54 = vadd.f32 %v2761_v19, %v2748_v42 }
 0x1b5   : > { %v2776_v29 = vadd.f32 %v2775_v50, %v2762_v54 }
 0x1b9   : > { %v2789_v51 = vpop.f32.mrf.mxu2 }
 0x1ba   : > { %v2803_v57 = vpop.f32.mrf.mxu3  ;;  %v2763_v12 = vpop.f32.mrf.mxu0  ;;  %v2790_v48 = vadd.f32 %v2789_v51, %v2776_v29 }
 0x1bb   : > { %v2777_v37 = vpop.f32.mrf.mxu1  ;;  %v2764_v53 = vadd.f32 %v2763_v12, %v2750_v41 }
 0x1bc   : > { %v2804_v58 = vadd.f32 %v2803_v57, %v2790_v48 }
 0x1bd   : > { %v2778_v63 = vadd.f32 %v2777_v37, %v2764_v53 }
 0x1c1   : > { %v2791_v32 = vpop.f32.mrf.mxu2 }
 0x1c2   : > { %v2805_v7 = vpop.f32.mrf.mxu3  ;;  %v2817_v47 = vpop.f32.mrf.mxu0  ;;  %v2792_v18 = vadd.f32 %v2791_v32, %v2778_v63 }
 0x1c3   : > { %v2831_v10 = vpop.f32.mrf.mxu1  ;;  %v2818_v28 = vadd.f32 %v2817_v47, %v2804_v58 }
 0x1c4   : > { %v2806_v46 = vadd.f32 %v2805_v7, %v2792_v18 }
 0x1c5   : > { %v2832_v25 = vadd.f32 %v2831_v10, %v2818_v28 }
 0x1c9   : > { %v2845_v31 = vpop.f32.mrf.mxu2 }
 0x1ca   : > { %v2859_v21 = vpop.f32.mrf.mxu3  ;;  %v2819_v11 = vpop.f32.mrf.mxu0  ;;  %v2846_v30 = vadd.f32 %v2845_v31, %v2832_v25 }
 0x1cb   : > { %v2833_v52 = vpop.f32.mrf.mxu1  ;;  %v2820_v62 = vadd.f32 %v2819_v11, %v2806_v46 }
 0x1cc   : > { %v2860_v39 = vadd.f32 %v2859_v21, %v2846_v30 }
 0x1cd   : > { %v2834_v36 = vadd.f32 %v2833_v52, %v2820_v62 }
 0x1d1   : > { %v2847_v1 = vpop.f32.mrf.mxu2 }
 0x1d2   : > { %v2861_v59 = vpop.f32.mrf.mxu3  ;;  %v2848_v35 = vadd.f32 %v2847_v1, %v2834_v36 }
 0x1d4   : > { %v2873_v2 = vpop.f32.mrf.mxu0  ;;  %v2862_v17 = vadd.f32 %v2861_v59, %v2848_v35 }
 0x1d5   : > { %v2887_v13 = vpop.f32.mrf.mxu1  ;;  %v2874_v16 = vadd.f32 %v2873_v2, %v2860_v39 }
 0x1d7   : > { %v2888_v4 = vadd.f32 %v2887_v13, %v2874_v16 }
 0x1dc   : > { %v2875_v3 = vpop.f32.mrf.mxu0 }
 0x1dd   : > { %v2901_v60 = vpop.f32.mrf.mxu2  ;;  %v2876_v49 = vadd.f32 %v2875_v3, %v2862_v17  ;;  %v2889_v56 = vpop.f32.mrf.mxu1 }
 0x1de   : > { %v2915_v33 = vpop.f32.mrf.mxu3  ;;  %v2902_v55 = vadd.f32 %v2901_v60, %v2888_v4 }
 0x1df   : > { %v2890_v20 = vadd.f32 %v2889_v56, %v2876_v49 }
 0x1e0   : > { %v2916_v45 = vadd.f32 %v2915_v33, %v2902_v55 }
 0x1e2   : > { %v2922_v5 = vmul.f32 0.2, %v2916_v45  ;;  %vm2920_vm4 = vcmp.gt.f32.partialorder %v2916_v45, 0.0 }
 0x1e4   : > { %v2924_v19 = vsel %vm2920_vm4, %v2916_v45, %v2922_v5 }
 0x1e5   : > { %v2903_v6 = vpop.f32.mrf.mxu2 }
 0x1e6   : > { %v2904_v8 = vadd.f32 %v2903_v6, %v2890_v20  ;;  %v2917_v61 = vpop.f32.mrf.mxu3 }
 0x1e8   : > { %v2918_v14 = vadd.f32 %v2917_v61, %v2904_v8 }
 0x1ea   : > { %vm2921_vm5 = vcmp.gt.f32.partialorder %v2918_v14, 0.0  ;;  %v2923_v15 = vmul.f32 0.2, %v2918_v14 }
 0x1ec   : > { %v2925_v50 = vsel %vm2921_vm5, %v2918_v14, %v2923_v15 }
 0x1ed   : > { %v2926_v9 = vpack.c.bf16 %v2925_v50, %v2924_v19 }
 0x1ef   : > { %3003 = vmatmul.bf16.vlgmr.msrb.gmra.mxu0 %v2926_v9 }
 0x26c   : > { %v3004_v24 = vpop.f32.mrf.mxu0 }
 0x26d   : > { %v3005_v51 = vadd.f32 %v4055_v22, %v3004_v24 }
 0x26f   : > { %v3009_v57 = vand.u32 2147483647, %v3005_v51  ;;  %vm3017_vm12 = vcmp.ge.f32.partialorder %v3005_v51, 0.0 }
 0x271   : > { %v3011_v27 = vsub.f32 0.0, %v3009_v57 }
 0x273   : > { %v3013_v26 = vmul.f32 1.442695, %v3011_v27 }
 0x274   : > { %v3006_v34 = vpop.f32.mrf.mxu0 }
 0x275   : > { %4056 = vpow2.f32 %v3013_v26  ;;  %v3007_v12 = vadd.f32 %v4055_v22, %v3006_v34 }
 0x277   : > { %v3010_v37 = vand.u32 2147483647, %v3007_v12  ;;  %vm3018_vm1 = vcmp.ge.f32.partialorder %v3007_v12, 0.0 }
 0x279   : > { %v3012_v42 = vsub.f32 0.0, %v3010_v37 }
 0x27b   : > { %v4057_v44 = vpop.eup %4056  ;;  %v3015_v23 = vmul.f32 1.442695, %v3012_v42 }
 0x27c   : > { %v3019_v54 = vadd.f32 1.0, %v4057_v44 }
 0x27d   : > { %4058 = vpow2.f32 %v3015_v23 }
 0x27e   : > { %4060 = vrcp.f32 %v3019_v54  ;;  %v3032_v41 = vand.u32 2147483648, %v3019_v54  ;;  %v3030_v43 = vand.u32 2147483647, %v3019_v54  ;;  %vm3026_vm9 = vweird.f32 %v3019_v54 }
 0x280   : > { %v3033_v58 = vor.u32 1.1754944e-38, %v3032_v41  ;;  %vm3031_vm11 = vcmp.eq.f32.partialorder %v3030_v43, 8.507059e+37 }
 0x283   : > { %v4059_v32 = vpop.eup %4058 }
 0x284   : > { %v4061_v7 = vpop.eup %4060  ;;  %v3020_v38 = vadd.f32 1.0, %v4059_v32 }
 0x285   : > { %v3022_v47 = vmul.f32 %v4061_v7, %v3019_v54  ;;  %vm3027_vm8 = vweird.f32 %v4061_v7 }
 0x286   : > { %4062 = vrcp.f32 %v3020_v38  ;;  %vm3028_vm10 = vmor %vm3026_vm9, %vm3027_vm8  ;;  %v3047_v18 = vand.u32 2147483648, %v3020_v38  ;;  %v3045_v0 = vand.u32 2147483647, %v3020_v38  ;;  %vm3041_vm14 = vweird.f32 %v3020_v38 }
 0x287   : > { %v3023_v10 = vsub.f32 1.0, %v3022_v47 }
 0x288   : > { %v3048_v25 = vor.u32 1.1754944e-38, %v3047_v18  ;;  %vm3046_vm0 = vcmp.eq.f32.partialorder %v3045_v0, 8.507059e+37 }
 0x289   : > { %v3024_v29 = vmul.f32 %v4061_v7, %v3023_v10 }
 0x28b   : > { %v3025_v48 = vadd.f32 %v4061_v7, %v3024_v29 }
 0x28c   : > { %v4063_v53 = vpop.eup %4062 }
 0x28d   : > { %v3029_v63 = vsel %vm3028_vm10, %v4061_v7, %v3025_v48  ;;  %v3037_v31 = vmul.f32 %v4063_v53, %v3020_v38  ;;  %vm3042_vm13 = vweird.f32 %v4063_v53 }
 0x28e   : > { %v3034_v21 = vsel %vm3031_vm11, %v3033_v58, %v3029_v63  ;;  %vm3043_vm15 = vmor %vm3041_vm14, %vm3042_vm13 }
 0x28f   : > { %v3051_v11 = vmul.f32 %v4057_v44, %v3034_v21  ;;  %v3038_v40 = vsub.f32 1.0, %v3037_v31 }
 0x291   : > { %v3053_v28 = vsel %vm3017_vm12, %v3034_v21, %v3051_v11  ;;  %v3039_v52 = vmul.f32 %v4063_v53, %v3038_v40 }
 0x292   : > { %3055 = vst [vmem:[%s278_s16] sm:$0xff] %v3053_v28 }
 0x293   : > { %v3040_v46 = vadd.f32 %v4063_v53, %v3039_v52 }
 0x295   : > { %v3044_v30 = vsel %vm3043_vm15, %v4063_v53, %v3040_v46 }
 0x296   : > { %v3049_v62 = vsel %vm3046_vm0, %v3048_v25, %v3044_v30 }
 0x297   : > { %v3052_v1 = vmul.f32 %v4059_v32, %v3049_v62 }
 0x299   : > { %v3054_v59 = vsel %vm3018_vm1, %v3049_v62, %v3052_v1 }
 0x29a   : > { %3056 = vst [vmem:[%s278_s16 + $0x8] sm:$0xff] %v3054_v59 }
 0x29b PF: > { %s17_s24 = sadd.s32 1, %s4070_s24  }
 0x29c   : > { %p14_p4 = scmp.ge.s32.totalorder %s17_s24, 4  }
 0x29e   :  { %16 = sbr.rel (!%p14_p4) target bundleno = 1 (0x1), region = 100 }

</bundles_post_ra>
